<compile_context>
chip_gen: v6e
topology: v6e:2x2x1
jax: 0.10.0
libtpu: 0.0.40
codegen_flags: <defaults>
</compile_context>

<pallas_src>
import functools

import jax
import jax.numpy as jnp
import numpy as np
from jax import lax
from jax.experimental import pallas as pl
from jax.experimental.pallas import tpu as pltpu

_LANE = 128
_SUBLANE = 8
_MAX_ROWS = 256            # target rows (MXU M) per grid step
_VMEM_BUDGET = 24 << 20    # conservative per-step budget (fits v7x's 64 MiB)
_VMEM_LIMIT = 48 << 20     # scoped-VMEM limit requested from the compiler


def _round_up(x, m):
    return ((x + m - 1) // m) * m


def _pad_to(x, shape):
    pads = [(0, t - s) for s, t in zip(x.shape, shape)]
    return jnp.pad(x, pads) if any(p for _, p in pads) else x


# ---------------------------------------------------------------------------
# In-kernel helpers (traced inside the Pallas kernels)
# ---------------------------------------------------------------------------
def _masked_softmax(scores, src_len, src_p):
    """Row softmax in f32; padded src columns (index >= src_len) excluded."""
    if src_p > src_len:
        col = lax.broadcasted_iota(jnp.int32, scores.shape, scores.ndim - 1)
        scores = jnp.where(col < src_len, scores, -jnp.inf)
    m = jnp.max(scores, axis=-1, keepdims=True)
    e = jnp.exp(scores - m)                      # exp(-inf) == 0 on the pad
    denom = jnp.sum(e, axis=-1, keepdims=True)
    return e * pl.reciprocal(denom, approx=True)


def _linear_out_tanh(c_f32, q, w_oc_ref, w_oq_ref):
    """tanh(linear_out([c, q])) as two accumulated K=dim matmuls (no concat
    buffer; on v7x the second dot accumulates into the MRB for free)."""
    out = jnp.dot(c_f32.astype(q.dtype), w_oc_ref[...],
                  preferred_element_type=jnp.float32)
    out = out + jnp.dot(q, w_oq_ref[...], preferred_element_type=jnp.float32)
    return jnp.tanh(out)


# ---------------------------------------------------------------------------
# Kernel 1: sequence path (tgt_len > 1).  One batch element and t_tile target
# rows per grid step; outputs are stored directly in the PyTorch
# (tgt_len, batch, ...) layout via (tgt, batch*feature) flattened-lane arrays.
# ---------------------------------------------------------------------------
def _seq_kernel(*refs, attn_type, src_len, src_p):
    if attn_type == "general":
        (src_ref, mem_ref, w_in_t_ref, w_oc_ref, w_oq_ref,
         attn_h_ref, align_ref) = refs
    else:
        src_ref, mem_ref, w_oc_ref, w_oq_ref, attn_h_ref, align_ref = refs

    q = src_ref[...]                              # (t_tile, dim_p)
    h = mem_ref[...]                              # (src_p,  dim_p)

    # ---- score(h_t, h_s) ----
    if attn_type == "general":
        # h_t_ = linear_in(h_t) == q @ W_in^T ; weight comes pre-transposed.
        qw = jnp.dot(q, w_in_t_ref[...], preferred_element_type=jnp.float32)
        q_score = qw.astype(q.dtype)
    else:                                         # 'dot'
        q_score = q

    # q_score @ h^T without materializing h^T (contract the last dims).
    scores = lax.dot_general(
        q_score, h, dimension_numbers=(((1,), (1,)), ((), ())),
        preferred_element_type=jnp.float32)       # (t_tile, src_p) f32

    attn = _masked_softmax(scores, src_len, src_p)

    # ---- context + output projection ----
    c = jnp.dot(attn.astype(h.dtype), h,
                preferred_element_type=jnp.float32)        # (t_tile, dim_p)
    out = _linear_out_tanh(c, q, w_oc_ref, w_oq_ref)

    attn_h_ref[...] = out.astype(attn_h_ref.dtype)
    align_ref[...] = attn.astype(align_ref.dtype)


# ---------------------------------------------------------------------------
# Kernel 2: one-step (decode, tgt_len == 1) path.  b_tile batch rows per step
# so the shared weight matmuls see a tall M; batch-major outputs already are
# the PyTorch layout for this path.
# ---------------------------------------------------------------------------
def _onestep_kernel(*refs, attn_type, b_tile, dim_p, src_len, src_p):
    if attn_type == "general":
        (src_ref, mem_ref, w_in_t_ref, w_oc_ref, w_oq_ref,
         attn_h_ref, align_ref) = refs
    else:
        src_ref, mem_ref, w_oc_ref, w_oq_ref, attn_h_ref, align_ref = refs

    q = src_ref[...]                              # (b_tile, dim_p)
    h = mem_ref[...]                              # (b_tile, src_p, dim_p)

    if attn_type == "general":
        qw = jnp.dot(q, w_in_t_ref[...], preferred_element_type=jnp.float32)
        q_score = qw.astype(q.dtype)
    else:
        q_score = q

    # Per-batch scores: each row has its own memory bank -> batched matvec.
    scores = lax.dot_general(
        q_score.reshape(b_tile, 1, dim_p), h,
        dimension_numbers=(((2,), (2,)), ((0,), (0,))),
        preferred_element_type=jnp.float32).reshape(b_tile, src_p)

    attn = _masked_softmax(scores, src_len, src_p)

    c = lax.dot_general(
        attn.astype(h.dtype).reshape(b_tile, 1, src_p), h,
        dimension_numbers=(((2,), (1,)), ((0,), (0,))),
        preferred_element_type=jnp.float32).reshape(b_tile, dim_p)
    out = _linear_out_tanh(c, q, w_oc_ref, w_oq_ref)

    attn_h_ref[...] = out.astype(attn_h_ref.dtype)
    align_ref[...] = attn.astype(align_ref.dtype)


# ---------------------------------------------------------------------------
# Tile sizing (MXU M target, bounded by a VMEM budget that also fits v7x)
# ---------------------------------------------------------------------------
def _step_vmem_bytes(rows, src_p, dim_p, itemsize, mem_rows):
    """Rough per-step VMEM: double-buffered blocks + weights + f32 temps."""
    blocks = (rows * dim_p                 # query block
              + mem_rows * src_p * dim_p   # memory-bank block
              + rows * dim_p               # attn_h output block
              + rows * src_p               # align output block
              ) * itemsize
    weights = 3 * dim_p * dim_p * itemsize
    f32_tmp = rows * (3 * src_p + 4 * dim_p) * 4
    return 2 * blocks + weights + f32_tmp


def _choose_t_tile(tgt_len, src_p, dim_p, itemsize):
    """tgt rows per step for the sequence kernel."""
    t_tile = min(tgt_len, _MAX_ROWS)
    while (t_tile > _SUBLANE and
           _step_vmem_bytes(t_tile, src_p, dim_p, itemsize, 1) > _VMEM_BUDGET):
        t_tile = _round_up(t_tile // 2, _SUBLANE)
    if t_tile >= tgt_len:
        return tgt_len, tgt_len            # single tgt block, no tgt padding
    t_tile = _round_up(t_tile, _SUBLANE)   # sublane-aligned partial tile
    return t_tile, _round_up(tgt_len, t_tile)


def _choose_b_tile(batch, src_p, dim_p, itemsize):
    """batch rows per step for the one-step (decode) kernel."""
    b_tile = min(_round_up(batch, _SUBLANE), _MAX_ROWS)
    while (b_tile > _SUBLANE and
           _step_vmem_bytes(b_tile, src_p, dim_p, itemsize, b_tile)
           > _VMEM_BUDGET):
        b_tile -= _SUBLANE
    if b_tile >= batch:
        # Whole batch in one step.  Split in two when it is cheap so v7x's
        # second TensorCore gets work (the grid axis is 'parallel').
        if batch % (2 * _SUBLANE) == 0 and batch >= 4 * _SUBLANE:
            return batch // 2, batch
        return batch, batch                # block == full dim, no padding
    return b_tile, _round_up(batch, b_tile)


def _cost_estimate(attn_type, rows, src_p, dim_p, itemsize, mem_elems):
    flops = 2 * rows * (2 * src_p * dim_p + 2 * dim_p * dim_p)
    if attn_type == "general":
        flops += 2 * rows * dim_p * dim_p
    bytes_accessed = itemsize * (rows * (2 * dim_p + src_p) + mem_elems
                                 + 3 * dim_p * dim_p)
    return pl.CostEstimate(flops=int(flops),
                           transcendentals=int(rows * (src_p + dim_p)),
                           bytes_accessed=int(bytes_accessed))


def _pallas_attention(kernel, grid, inputs, data_specs, n_weights, dim_p,
                      w_index_map, out_shapes, out_specs, cost, dim_sem):
    """Build and run the pallas_call.  Weight inputs (constant block index)
    request a single VMEM buffer; falls back transparently if this jax does
    not support BlockSpec(pipeline_mode=...)."""
    def call(single_buffer_weights):
        wkw = ({"pipeline_mode": pl.Buffered(1)}
               if single_buffer_weights else {})
        w_specs = [pl.BlockSpec((dim_p, dim_p), w_index_map, **wkw)
                   for _ in range(n_weights)]
        return pl.pallas_call(
            kernel,
            out_shape=out_shapes,
            grid_spec=pltpu.PrefetchScalarGridSpec(
                num_scalar_prefetch=0,
                grid=grid,
                in_specs=list(data_specs) + w_specs,
                out_specs=list(out_specs)),
            compiler_params=pltpu.CompilerParams(
                dimension_semantics=dim_sem,
                vmem_limit_bytes=_VMEM_LIMIT),
            cost_estimate=cost,
        )(*inputs)

    try:
        return call(True)
    except Exception:  # pragma: no cover - jax without BlockSpec pipeline_mode
        return call(False)


# ---------------------------------------------------------------------------
# Public wrapper
# ---------------------------------------------------------------------------
def global_attention(source, memory_bank, w_in, w_out, *, attn_type="dot"):
    """Pallas implementation of GlobalAttention.forward
    (attn_func='softmax', coverage=False, memory_lengths=None).

    source      : [batch, tgt_len, dim]  (or [batch, dim] for one_step)
    memory_bank : [batch, src_len, dim]
    w_in        : [dim, dim]      linear_in.weight (ignored for 'dot')
    w_out       : [dim, 2*dim]    linear_out.weight (no bias for dot/general)

    Returns (attn_h, align_vectors) matching the PyTorch module:
      attn_h        : [tgt_len, batch, dim]     (or [batch, dim] if one_step)
      align_vectors : [tgt_len, batch, src_len] (or [batch, src_len])
    """
    assert attn_type in ("dot", "general")
    one_step = source.ndim == 2
    if one_step:
        source = source[:, None, :]

    batch, src_len, dim = memory_bank.shape
    assert source.shape[0] == batch and source.shape[2] == dim
    tgt_len = source.shape[1]
    in_dtype = source.dtype
    itemsize = jnp.dtype(in_dtype).itemsize

    # Lane-dense padding of the feature / source-length axes.
    dim_p = _round_up(dim, _LANE)
    src_p = _round_up(src_len, _LANE)

    # Pre-transpose the weights once outside the kernel (input dtype -> bf16
    # friendly MXU operands) and split linear_out into its c / q halves.
    # Zero padding keeps the math exact.
    w_oc_t = _pad_to(jnp.transpose(w_out[:, :dim]).astype(in_dtype),
                     (dim_p, dim_p))
    w_oq_t = _pad_to(jnp.transpose(w_out[:, dim:]).astype(in_dtype),
                     (dim_p, dim_p))
    weights = []
    if attn_type == "general":
        weights.append(_pad_to(jnp.transpose(w_in).astype(in_dtype),
                               (dim_p, dim_p)))
    weights += [w_oc_t, w_oq_t]

    mem_pad = _pad_to(memory_bank, (batch, src_p, dim_p))

    if tgt_len > 1:
        # ---------------- sequence path ----------------
        t_tile, tgt_p = _choose_t_tile(tgt_len, src_p, dim_p, itemsize)
        src_pad = _pad_to(source, (batch, tgt_p, dim_p))
        # t innermost: the per-batch memory-bank block is fetched once per b.
        grid = (batch, tgt_p // t_tile)

        kernel = functools.partial(_seq_kernel, attn_type=attn_type,
                                   src_len=src_len, src_p=src_p)
        data_specs = [
            pl.BlockSpec((None, t_tile, dim_p), lambda b, t: (b, t, 0)),
            pl.BlockSpec((None, src_p, dim_p), lambda b, t: (b, 0, 0)),
        ]
        # Outputs already in the PyTorch (tgt, batch, feat) order, stored as
        # the row-major-equivalent (tgt, batch*feat) so every output block is
        # a dense (t_tile, 128k) tile (no masked partial stores).
        out_shapes = (
            jax.ShapeDtypeStruct((tgt_p, batch * dim_p), in_dtype),
            jax.ShapeDtypeStruct((tgt_p, batch * src_p), in_dtype),
        )
        out_specs = [
            pl.BlockSpec((t_tile, dim_p), lambda b, t: (t, b)),
            pl.BlockSpec((t_tile, src_p), lambda b, t: (t, b)),
        ]
        cost = _cost_estimate(attn_type, batch * tgt_p, src_p, dim_p,
                              itemsize, batch * src_p * dim_p)
        attn_h_2d, align_2d = _pallas_attention(
            kernel, grid, [src_pad, mem_pad] + weights, data_specs,
            len(weights), dim_p, lambda b, t: (0, 0), out_shapes, out_specs,
            cost, ("parallel", "parallel"))

        # Free row-major reshape; the slice only copies if padding was added.
        attn_h = attn_h_2d.reshape(tgt_p, batch, dim_p)[:tgt_len, :, :dim]
        align = align_2d.reshape(tgt_p, batch, src_p)[:tgt_len, :, :src_len]
        # TODO(synk): for very long src_len, add a flash-style online-softmax
        # loop over src chunks; for tiny tgt_len with huge batch, blocking
        # several batch elements per step would need an in-kernel major-axis
        # swap before the store.
        return attn_h, align

    # ---------------- one-step (decode) path: tgt_len == 1 ----------------
    q2d = _pad_to(source[:, 0, :], (batch, dim_p))
    b_tile, batch_p = _choose_b_tile(batch, src_p, dim_p, itemsize)
    if batch_p > batch:
        q2d = _pad_to(q2d, (batch_p, dim_p))
        mem_pad = _pad_to(mem_pad, (batch_p, src_p, dim_p))
    grid = (batch_p // b_tile,)

    kernel = functools.partial(_onestep_kernel, attn_type=attn_type,
                               b_tile=b_tile, dim_p=dim_p,
                               src_len=src_len, src_p=src_p)
    data_specs = [
        pl.BlockSpec((b_tile, dim_p), lambda b: (b, 0)),
        pl.BlockSpec((b_tile, src_p, dim_p), lambda b: (b, 0, 0)),
    ]
    out_shapes = (
        jax.ShapeDtypeStruct((batch_p, dim_p), in_dtype),
        jax.ShapeDtypeStruct((batch_p, src_p), in_dtype),
    )
    out_specs = [
        pl.BlockSpec((b_tile, dim_p), lambda b: (b, 0)),
        pl.BlockSpec((b_tile, src_p), lambda b: (b, 0)),
    ]
    cost = _cost_estimate(attn_type, batch_p, src_p, dim_p, itemsize,
                          batch_p * src_p * dim_p)
    attn_h2, align2 = _pallas_attention(
        kernel, grid, [q2d, mem_pad] + weights, data_specs, len(weights),
        dim_p, lambda b: (0, 0), out_shapes, out_specs, cost, ("parallel",))

    attn_h2 = attn_h2[:batch, :dim]
    align2 = align2[:batch, :src_len]
    if one_step:
        return attn_h2, align2
    return attn_h2[None], align2[None]           # [1, batch, .] layouts


# ---------------------------------------------------------------------------
# Pure-JAX reference and self-test
# ---------------------------------------------------------------------------
def _reference(source, memory_bank, w_in, w_out, attn_type="dot"):
    """Pure-JAX f32 reference mirroring the PyTorch forward (softmax path)."""
    one_step = source.ndim == 2
    if one_step:
        source = source[:, None, :]
    src = source.astype(jnp.float32)
    mem = memory_bank.astype(jnp.float32)
    w_in = w_in.astype(jnp.float32)
    w_out = w_out.astype(jnp.float32)

    q = src
    if attn_type == "general":
        q = jnp.einsum("btd,ed->bte", q, w_in)
    align = jnp.einsum("btd,bsd->bts", q, mem)
    align_vectors = jax.nn.softmax(align, axis=-1)
    c = jnp.einsum("bts,bsd->btd", align_vectors, mem)
    concat_c = jnp.concatenate([c, src], axis=-1)
    attn_h = jnp.einsum("btk,dk->btd", concat_c, w_out)
    attn_h = jnp.tanh(attn_h)
    if one_step:
        return attn_h[:, 0, :], align_vectors[:, 0, :]
    return (jnp.transpose(attn_h, (1, 0, 2)),
            jnp.transpose(align_vectors, (1, 0, 2)))


if __name__ == "__main__":
    batch, tgt_len, src_len, dim = 2, 4, 8, 32

    key = jax.random.PRNGKey(0)
    k_src, k_mem, k_win, k_wout = jax.random.split(key, 4)

    source_f32 = jax.random.normal(k_src, (batch, tgt_len, dim), jnp.float32)
    memory_f32 = jax.random.normal(k_mem, (batch, src_len, dim), jnp.float32)

    # Deterministic parameter init (PyTorch Linear-like uniform bounds).
    bound_in = 1.0 / np.sqrt(dim)
    bound_out = 1.0 / np.sqrt(2 * dim)
    w_in = jax.random.uniform(k_win, (dim, dim), jnp.float32,
                              -bound_in, bound_in)        # linear_in.weight
    w_out = jax.random.uniform(k_wout, (dim, 2 * dim), jnp.float32,
                               -bound_out, bound_out)     # linear_out.weight

    # Tolerances: approx (EUP) reciprocal in the softmax for f32; additionally
    # bf16 MXU operands (f32 accumulate) for the bf16 run.
    cases = [(jnp.float32, 2e-3, 2e-3), (jnp.bfloat16, 3e-2, 3e-2)]

    for dtype, rtol, atol in cases:
        source = source_f32.astype(dtype)
        memory_bank = memory_f32.astype(dtype)
        for attn_type in ("dot", "general"):
            attn_h, align = global_attention(source, memory_bank, w_in, w_out,
                                             attn_type=attn_type)
            jax.block_until_ready(attn_h)
            jax.block_until_ready(align)

            ref_h, ref_a = _reference(source, memory_bank, w_in, w_out,
                                      attn_type)
            np.testing.assert_allclose(
                np.asarray(attn_h, dtype=np.float32), np.asarray(ref_h),
                rtol=rtol, atol=atol)
            np.testing.assert_allclose(
                np.asarray(align, dtype=np.float32), np.asarray(ref_a),
                rtol=rtol, atol=atol)

            assert attn_h.shape == (tgt_len, batch, dim)
            assert align.shape == (tgt_len, batch, src_len)

    # One-step (2-D query) path, like decoding a single step.
    q1 = source_f32[:, 0, :]
    attn_h1, align1 = global_attention(q1, memory_f32, w_in, w_out,
                                       attn_type="general")
    jax.block_until_ready(attn_h1)
    ref_h1, ref_a1 = _reference(q1, memory_f32, w_in, w_out, "general")
    np.testing.assert_allclose(np.asarray(attn_h1), np.asarray(ref_h1),
                               rtol=2e-3, atol=2e-3)
    np.testing.assert_allclose(np.asarray(align1), np.asarray(ref_a1),
                               rtol=2e-3, atol=2e-3)
    assert attn_h1.shape == (batch, dim) and align1.shape == (batch, src_len)

    # TODO(synk): memory_lengths masking, sparsemax, coverage and the 'mlp'
    # attention type are not implemented (module defaults are used).
    print("KERNEL_OK")
</pallas_src>

<mosaic_0001>
module attributes {stable_mosaic.version = 11 : i64} {
  func.func @_seq_kernel(%arg0: i32, %arg1: i32, %arg2: memref<1x4x128xf32, #tpu.memory_space<vmem>>, %arg3: memref<1x128x128xf32, #tpu.memory_space<vmem>>, %arg4: memref<128x128xf32, #tpu.memory_space<vmem>>, %arg5: memref<128x128xf32, #tpu.memory_space<vmem>>, %arg6: memref<4x128xf32, #tpu.memory_space<vmem>>, %arg7: memref<4x128xf32, #tpu.memory_space<vmem>>) attributes {dimension_semantics = [#tpu.dimension_semantics<parallel>, #tpu.dimension_semantics<parallel>], iteration_bounds = array<i64: 2, 1>, scalar_prefetch = 0 : i64, scratch_operands = 0 : i64, tpu.core_type = #tpu.core_type<tc>, window_params = [{transform_indices = @transform_0, window_bounds = array<i64: 1, 4, 128>}, {transform_indices = @transform_1, window_bounds = array<i64: 1, 128, 128>}, {pipeline_mode = #tpu.pipeline_mode<synchronous>, transform_indices = @transform_2, window_bounds = array<i64: 128, 128>}, {pipeline_mode = #tpu.pipeline_mode<synchronous>, transform_indices = @transform_3, window_bounds = array<i64: 128, 128>}, {transform_indices = @transform_4, window_bounds = array<i64: 4, 128>}, {transform_indices = @transform_5, window_bounds = array<i64: 4, 128>}]} {
    %c0 = arith.constant 0 : index
    %c0_0 = arith.constant 0 : index
    %c0_1 = arith.constant 0 : index
    %0 = vector.load %arg2[%c0, %c0_0, %c0_1] : memref<1x4x128xf32, #tpu.memory_space<vmem>>, vector<1x4x128xf32>
    %1 = vector.shape_cast %0 : vector<1x4x128xf32> to vector<4x128xf32>
    %c0_2 = arith.constant 0 : index
    %c0_3 = arith.constant 0 : index
    %c0_4 = arith.constant 0 : index
    %2 = vector.load %arg3[%c0_2, %c0_3, %c0_4] : memref<1x128x128xf32, #tpu.memory_space<vmem>>, vector<1x128x128xf32>
    %3 = vector.shape_cast %2 : vector<1x128x128xf32> to vector<128x128xf32>
    %cst = arith.constant dense<0.000000e+00> : vector<4x128xf32>
    %4 = tpu.matmul %1, %3, %cst {dimension_numbers = #tpu.dot_dimension_numbers<[1], [1], [0], [0], [0, 0, 1, 0], [], []>} : vector<4x128xf32>, vector<128x128xf32>, vector<4x128xf32> -> vector<4x128xf32>
    %5 = tpu.iota {dimensions = array<i32: 1>} : vector<4x128xi32>
    %c8_i32 = arith.constant 8 : i32
    %6 = vector.broadcast %c8_i32 : i32 to vector<4x128xi32>
    %7 = arith.cmpi slt, %5, %6 : vector<4x128xi32>
    %cst_5 = arith.constant 0xFF800000 : f32
    %8 = vector.broadcast %cst_5 : f32 to vector<4x128xf32>
    %9 = arith.select %7, %4, %8 : vector<4x128xi1>, vector<4x128xf32>
    %cst_6 = arith.constant dense<0xFF800000> : vector<4xf32>
    %10 = vector.multi_reduction <maximumf>, %9, %cst_6 [1] : vector<4x128xf32> to vector<4xf32>
    %11 = vector.shape_cast %10 : vector<4xf32> to vector<4x1xf32>
    %12 = vector.broadcast %11 : vector<4x1xf32> to vector<4x128xf32>
    %13 = arith.subf %9, %12 : vector<4x128xf32>
    %14 = math.exp %13 : vector<4x128xf32>
    %cst_7 = arith.constant dense<0.000000e+00> : vector<4xf32>
    %15 = vector.multi_reduction <add>, %14, %cst_7 [1] : vector<4x128xf32> to vector<4xf32>
    %16 = vector.shape_cast %15 : vector<4xf32> to vector<4x1xf32>
    %17 = tpu.reciprocal %16 {approx = true} : vector<4x1xf32> -> vector<4x1xf32>
    %18 = vector.broadcast %17 : vector<4x1xf32> to vector<4x128xf32>
    %19 = arith.mulf %14, %18 : vector<4x128xf32>
    %cst_8 = arith.constant dense<0.000000e+00> : vector<4x128xf32>
    %20 = tpu.matmul %19, %3, %cst_8 {dimension_numbers = #tpu.dot_dimension_numbers<[1], [0], [0], [1], [0, 0, 1, 1], [], []>} : vector<4x128xf32>, vector<128x128xf32>, vector<4x128xf32> -> vector<4x128xf32>
    %c0_9 = arith.constant 0 : index
    %c0_10 = arith.constant 0 : index
    %21 = vector.load %arg4[%c0_9, %c0_10] : memref<128x128xf32, #tpu.memory_space<vmem>>, vector<128x128xf32>
    %cst_11 = arith.constant dense<0.000000e+00> : vector<4x128xf32>
    %22 = tpu.matmul %20, %21, %cst_11 {dimension_numbers = #tpu.dot_dimension_numbers<[1], [0], [0], [1], [0, 0, 1, 1], [], []>} : vector<4x128xf32>, vector<128x128xf32>, vector<4x128xf32> -> vector<4x128xf32>
    %c0_12 = arith.constant 0 : index
    %c0_13 = arith.constant 0 : index
    %23 = vector.load %arg5[%c0_12, %c0_13] : memref<128x128xf32, #tpu.memory_space<vmem>>, vector<128x128xf32>
    %cst_14 = arith.constant dense<0.000000e+00> : vector<4x128xf32>
    %24 = tpu.matmul %1, %23, %cst_14 {dimension_numbers = #tpu.dot_dimension_numbers<[1], [0], [0], [1], [0, 0, 1, 1], [], []>} : vector<4x128xf32>, vector<128x128xf32>, vector<4x128xf32> -> vector<4x128xf32>
    %25 = arith.addf %22, %24 : vector<4x128xf32>
    %26 = math.tanh %25 : vector<4x128xf32>
    %c0_15 = arith.constant 0 : index
    %c0_16 = arith.constant 0 : index
    %27 = vector.load %arg6[%c0_15, %c0_16] : memref<4x128xf32, #tpu.memory_space<vmem>>, vector<4x128xf32>
    tpu.vector_store %arg6[%c0_15, %c0_16], %26 {strides = array<i32>} : memref<4x128xf32, #tpu.memory_space<vmem>>, vector<4x128xf32>,
    %c0_17 = arith.constant 0 : index
    %c0_18 = arith.constant 0 : index
    %28 = vector.load %arg7[%c0_17, %c0_18] : memref<4x128xf32, #tpu.memory_space<vmem>>, vector<4x128xf32>
    tpu.vector_store %arg7[%c0_17, %c0_18], %19 {strides = array<i32>} : memref<4x128xf32, #tpu.memory_space<vmem>>, vector<4x128xf32>,
    return
  }
  func.func @transform_0(%arg0: i32, %arg1: i32) -> (i32, i32, i32) {
    %c0_i32 = arith.constant 0 : i32
    %c0_i32_0 = arith.constant 0 : i32
    return %arg0, %arg1, %c0_i32 : i32, i32, i32
  }
  func.func @transform_1(%arg0: i32, %arg1: i32) -> (i32, i32, i32) {
    %c0_i32 = arith.constant 0 : i32
    %c0_i32_0 = arith.constant 0 : i32
    %c0_i32_1 = arith.constant 0 : i32
    return %arg0, %c0_i32, %c0_i32_0 : i32, i32, i32
  }
  func.func @transform_2(%arg0: i32, %arg1: i32) -> (i32, i32) {
    %c0_i32 = arith.constant 0 : i32
    %c0_i32_0 = arith.constant 0 : i32
    %c0_i32_1 = arith.constant 0 : i32
    return %c0_i32, %c0_i32_0 : i32, i32
  }
  func.func @transform_3(%arg0: i32, %arg1: i32) -> (i32, i32) {
    %c0_i32 = arith.constant 0 : i32
    %c0_i32_0 = arith.constant 0 : i32
    %c0_i32_1 = arith.constant 0 : i32
    return %c0_i32, %c0_i32_0 : i32, i32
  }
  func.func @transform_4(%arg0: i32, %arg1: i32) -> (i32, i32) {
    %c0_i32 = arith.constant 0 : i32
    return %arg1, %arg0 : i32, i32
  }
  func.func @transform_5(%arg0: i32, %arg1: i32) -> (i32, i32) {
    %c0_i32 = arith.constant 0 : i32
    return %arg1, %arg0 : i32, i32
  }
}

module attributes {stable_mosaic.version = 11 : i64} {
  func.func @_seq_kernel(%arg0: i32, %arg1: i32, %arg2: memref<1x4x128xf32, #tpu.memory_space<vmem>>, %arg3: memref<1x128x128xf32, #tpu.memory_space<vmem>>, %arg4: memref<128x128xf32, #tpu.memory_space<vmem>>, %arg5: memref<128x128xf32, #tpu.memory_space<vmem>>, %arg6: memref<4x128xf32, #tpu.memory_space<vmem>>, %arg7: memref<4x128xf32, #tpu.memory_space<vmem>>) attributes {dimension_semantics = [#tpu.dimension_semantics<parallel>, #tpu.dimension_semantics<parallel>], iteration_bounds = array<i64: 2, 1>, scalar_prefetch = 0 : i64, scratch_operands = 0 : i64, tpu.core_type = #tpu.core_type<tc>, window_params = [{transform_indices = @transform_0, window_bounds = array<i64: 1, 4, 128>}, {transform_indices = @transform_1, window_bounds = array<i64: 1, 128, 128>}, {pipeline_mode = #tpu.pipeline_mode<synchronous>, transform_indices = @transform_2, window_bounds = array<i64: 128, 128>}, {pipeline_mode = #tpu.pipeline_mode<synchronous>, transform_indices = @transform_3, window_bounds = array<i64: 128, 128>}, {transform_indices = @transform_4, window_bounds = array<i64: 4, 128>}, {transform_indices = @transform_5, window_bounds = array<i64: 4, 128>}]} {
    %c0 = arith.constant 0 : index
    %c0_0 = arith.constant 0 : index
    %c0_1 = arith.constant 0 : index
    %0 = vector.load %arg2[%c0, %c0_0, %c0_1] : memref<1x4x128xf32, #tpu.memory_space<vmem>>, vector<1x4x128xf32>
    %1 = vector.shape_cast %0 : vector<1x4x128xf32> to vector<4x128xf32>
    %c0_2 = arith.constant 0 : index
    %c0_3 = arith.constant 0 : index
    %c0_4 = arith.constant 0 : index
    %2 = vector.load %arg3[%c0_2, %c0_3, %c0_4] : memref<1x128x128xf32, #tpu.memory_space<vmem>>, vector<1x128x128xf32>
    %3 = vector.shape_cast %2 : vector<1x128x128xf32> to vector<128x128xf32>
    %cst = arith.constant dense<0.000000e+00> : vector<4x128xf32>
    %4 = tpu.matmul %1, %3, %cst {dimension_numbers = #tpu.dot_dimension_numbers<[1], [1], [0], [0], [0, 0, 1, 0], [], []>} : vector<4x128xf32>, vector<128x128xf32>, vector<4x128xf32> -> vector<4x128xf32>
    %5 = tpu.iota {dimensions = array<i32: 1>} : vector<4x128xi32>
    %c8_i32 = arith.constant 8 : i32
    %6 = vector.broadcast %c8_i32 : i32 to vector<4x128xi32>
    %7 = arith.cmpi slt, %5, %6 : vector<4x128xi32>
    %cst_5 = arith.constant 0xFF800000 : f32
    %8 = vector.broadcast %cst_5 : f32 to vector<4x128xf32>
    %9 = arith.select %7, %4, %8 : vector<4x128xi1>, vector<4x128xf32>
    %cst_6 = arith.constant dense<0xFF800000> : vector<4xf32>
    %10 = vector.multi_reduction <maximumf>, %9, %cst_6 [1] : vector<4x128xf32> to vector<4xf32>
    %11 = vector.shape_cast %10 : vector<4xf32> to vector<4x1xf32>
    %12 = vector.broadcast %11 : vector<4x1xf32> to vector<4x128xf32>
    %13 = arith.subf %9, %12 : vector<4x128xf32>
    %14 = math.exp %13 : vector<4x128xf32>
    %cst_7 = arith.constant dense<0.000000e+00> : vector<4xf32>
    %15 = vector.multi_reduction <add>, %14, %cst_7 [1] : vector<4x128xf32> to vector<4xf32>
    %16 = vector.shape_cast %15 : vector<4xf32> to vector<4x1xf32>
    %17 = tpu.reciprocal %16 {approx = true} : vector<4x1xf32> -> vector<4x1xf32>
    %18 = vector.broadcast %17 : vector<4x1xf32> to vector<4x128xf32>
    %19 = arith.mulf %14, %18 : vector<4x128xf32>
    %cst_8 = arith.constant dense<0.000000e+00> : vector<4x128xf32>
    %20 = tpu.matmul %19, %3, %cst_8 {dimension_numbers = #tpu.dot_dimension_numbers<[1], [0], [0], [1], [0, 0, 1, 1], [], []>} : vector<4x128xf32>, vector<128x128xf32>, vector<4x128xf32> -> vector<4x128xf32>
    %c0_9 = arith.constant 0 : index
    %c0_10 = arith.constant 0 : index
    %21 = vector.load %arg4[%c0_9, %c0_10] : memref<128x128xf32, #tpu.memory_space<vmem>>, vector<128x128xf32>
    %cst_11 = arith.constant dense<0.000000e+00> : vector<4x128xf32>
    %22 = tpu.matmul %20, %21, %cst_11 {dimension_numbers = #tpu.dot_dimension_numbers<[1], [0], [0], [1], [0, 0, 1, 1], [], []>} : vector<4x128xf32>, vector<128x128xf32>, vector<4x128xf32> -> vector<4x128xf32>
    %c0_12 = arith.constant 0 : index
    %c0_13 = arith.constant 0 : index
    %23 = vector.load %arg5[%c0_12, %c0_13] : memref<128x128xf32, #tpu.memory_space<vmem>>, vector<128x128xf32>
    %cst_14 = arith.constant dense<0.000000e+00> : vector<4x128xf32>
    %24 = tpu.matmul %1, %23, %cst_14 {dimension_numbers = #tpu.dot_dimension_numbers<[1], [0], [0], [1], [0, 0, 1, 1], [], []>} : vector<4x128xf32>, vector<128x128xf32>, vector<4x128xf32> -> vector<4x128xf32>
    %25 = arith.addf %22, %24 : vector<4x128xf32>
    %26 = math.tanh %25 : vector<4x128xf32>
    %c0_15 = arith.constant 0 : index
    %c0_16 = arith.constant 0 : index
    %27 = vector.load %arg6[%c0_15, %c0_16] : memref<4x128xf32, #tpu.memory_space<vmem>>, vector<4x128xf32>
    tpu.vector_store %arg6[%c0_15, %c0_16], %26 {strides = array<i32>} : memref<4x128xf32, #tpu.memory_space<vmem>>, vector<4x128xf32>,
    %c0_17 = arith.constant 0 : index
    %c0_18 = arith.constant 0 : index
    %28 = vector.load %arg7[%c0_17, %c0_18] : memref<4x128xf32, #tpu.memory_space<vmem>>, vector<4x128xf32>
    tpu.vector_store %arg7[%c0_17, %c0_18], %19 {strides = array<i32>} : memref<4x128xf32, #tpu.memory_space<vmem>>, vector<4x128xf32>,
    return
  }
  func.func @transform_0(%arg0: i32, %arg1: i32) -> (i32, i32, i32) {
    %c0_i32 = arith.constant 0 : i32
    %c0_i32_0 = arith.constant 0 : i32
    return %arg0, %arg1, %c0_i32 : i32, i32, i32
  }
  func.func @transform_1(%arg0: i32, %arg1: i32) -> (i32, i32, i32) {
    %c0_i32 = arith.constant 0 : i32
    %c0_i32_0 = arith.constant 0 : i32
    %c0_i32_1 = arith.constant 0 : i32
    return %arg0, %c0_i32, %c0_i32_0 : i32, i32, i32
  }
  func.func @transform_2(%arg0: i32, %arg1: i32) -> (i32, i32) {
    %c0_i32 = arith.constant 0 : i32
    %c0_i32_0 = arith.constant 0 : i32
    %c0_i32_1 = arith.constant 0 : i32
    return %c0_i32, %c0_i32_0 : i32, i32
  }
  func.func @transform_3(%arg0: i32, %arg1: i32) -> (i32, i32) {
    %c0_i32 = arith.constant 0 : i32
    %c0_i32_0 = arith.constant 0 : i32
    %c0_i32_1 = arith.constant 0 : i32
    return %c0_i32, %c0_i32_0 : i32, i32
  }
  func.func @transform_4(%arg0: i32, %arg1: i32) -> (i32, i32) {
    %c0_i32 = arith.constant 0 : i32
    return %arg1, %arg0 : i32, i32
  }
  func.func @transform_5(%arg0: i32, %arg1: i32) -> (i32, i32) {
    %c0_i32 = arith.constant 0 : i32
    return %arg1, %arg0 : i32, i32
  }
}

</mosaic_0001>

<bundles_post_ra>
// kernel: tpu_custom_call.1
= control target key start
LH: loop header
LB: loop body
LE: loop exit
PB: predicated region body
PF: predicated region fallthrough
CT: control target
= control target key end

     0   :  { %s1821_s0 = inlined_call_operand.hbm [shape: f32[2,4,128], index: 0, kind: input, shape index: {}]   ;;  %s1822_s1 = inlined_call_operand.hbm [shape: f32[2,128,128], index: 1, kind: input, shape index: {}]   ;;  %s1823_s2 = inlined_call_operand.hbm [shape: f32[128,128], index: 2, kind: input, shape index: {}]   ;;  %s1824_s3 = inlined_call_operand.hbm [shape: f32[128,128], index: 3, kind: input, shape index: {}]   ;;  %s1825_s4 = inlined_call_operand.hbm [shape: f32[4,256], index: 4, kind: output, shape index: {0}]   ;;  %s1826_s5 = inlined_call_operand.hbm [shape: f32[4,256], index: 5, kind: output, shape index: {1}]  }
   0x1   :  { %1830 = sst [smem:[#allocation20_spill]] %s1821_s0 }
   0x2   :  { %1831 = sst [smem:[#allocation21_spill]] %s1823_s2 }
   0x3   :  { %1832 = sst [smem:[#allocation22_spill]] %s1824_s3 }
   0x4   :  { %11 = vsyncpa [#allocation3], 0 }
   0x5   :  { %13 = vsyncpa [#allocation3 + $0x1], 0 }
   0x6   :  { %14 = vsyncpa [#allocation6], 0 }
   0x7   :  { %16 = vsyncpa [#allocation6 + $0x1], 0 }
   0x8   :  { %17 = vsyncpa [#allocation9], 0 }
   0x9   :  { %18 = vsyncpa [#allocation4], 0 }
   0xa   :  { %20 = vsyncpa [#allocation4 + $0x1], 0 }
   0xb   :  { %21 = vsyncpa [#allocation12], 0 }
   0xc   :  { %23 = vsyncpa [#allocation12 + $0x1], 0  ;;  %s1488_s18 = smov 0   ;;  %s1490_s19 = smov 0  }
   0xd   :  { %s1492_s20 = smov 0   ;;  %s1494_s21 = smov 0  }
   0xe   :  { %s1496_s22 = smov 0   ;;  %s1498_s23 = smov 0  }
   0xf LB: > { %s1519_s24 = sadd.s32 4294967295, %s1446_s23   ;;  %s881_s25 = sadd.s32 4294967294, %s1446_s23   ;;  %s1446_s23 = sphi %s1498_s23, %s29_s23   ;;  %s1442_s22 = sphi %s1496_s22, %s1851_s22   ;;  %s1438_s21 = sphi %s1494_s21, %s1850_s21   ;;  %s1434_s20 = sphi %s1492_s20, %s1849_s20   ;;  %s1430_s19 = sphi %s1490_s19, %s1848_s19   ;;  %s1426_s18 = sphi %s1488_s18, %s1847_s18  }
  0x10   : > { %p63_p0 = scmp.ne.s32.totalorder %s1430_s19, %s1426_s18  ;;  %p64_p1 = scmp.eq.s32.totalorder %s1519_s24, 0 }
  0x11   : > { %p157_p2 = scmp.eq.s32.totalorder %s1519_s24, 1  ;;  %p163_p3 = scmp.eq.s32.totalorder %s881_s25, 1 }
  0x12   : > { %p1528_p4 = por %p64_p1, %p63_p0  ;;  %p882_p5 = scmp.ge.s32.totalorder %s1446_s23, 1 }
  0x13   : > { %p1533_p6 = por %p163_p3, %p63_p0  ;;  %p198_p7 = scmp.lt.s32.totalorder %s1446_s23, 3 }
  0x14   : > { %s1448_s29 = smov [#allocation7]   ;;  %s1449_s7 = smov [#allocation8]  }
  0x15   : > { %p1538_p8 = pnand %p882_p5, %p198_p7  ;;  %s210_s30 = sshll.u32 %s1448_s29, 4  ;;  %s211_s30 = int_to_ptr.vmem [resolvable:$true] %s210_s30 }
  0x16   : > { %s223_s8 = sshll.u32 %s1449_s7, 4  ;;  %s1227_s9 = scalar_lea.vmem %s211_s30, 2048  ;;  %s224_s8 = int_to_ptr.vmem [resolvable:$true] %s223_s8 }
  0x17   : > { %p1129_p9 = pneg %p1538_p8  ;;  %p1228_p13 = scmp.ne.s32.totalorder %s211_s30, %s1227_s9 }
  0x18   : > { %p1235_p5 = scmp.lt.s32.totalorder %s211_s30, %s211_s30  ;;  %p1236_p7 = scmp.lt.s32.totalorder %s1227_s9, %s1227_s9 }
  0x19   : > { %p1547_p11 = pnand %p1129_p9, %p64_p1 }
  0x1a   : > { %p1237_p10 = por %p1236_p7, %p1235_p5 }
  0x1b   : > { %p1218_p12 = pneg %p1547_p11 }
  0x1d   : > { %p1230_p0 = pnand %p1228_p13, %p1218_p12 }
  0x1f   : > { %p1231_p3 = pneg %p1230_p0 }
  0x21   : > { %p1238_p9 = pnand %p1237_p10, %p1231_p3 }
  0x23   : > { %1241 = shalt.err (!%p1238_p9)
}
  0x24   : > { %s1827_s10 = smov 128   ;;  %s1828_s11 = smov 8  }
  0x25   : > { %s1837_s2 = sld [smem:[#allocation21_spill]]  ;;  %s1253_s14 = scalar_lea.vmem %s224_s8, 2048 }
  0x26   : > { %p1254_p13 = scmp.ne.s32.totalorder %s224_s8, %s1253_s14  ;;  %p1261_p10 = scmp.lt.s32.totalorder %s224_s8, %s224_s8 }
  0x27   : > { %p1262_p3 = scmp.lt.s32.totalorder %s1253_s14, %s1253_s14 }
  0x28   : > { %p1256_p0 = pnand %p1254_p13, %p1218_p12 }
  0x29   : > { %p1263_p7 = por %p1262_p3, %p1261_p10 }
  0x2a   : > { %p1257_p5 = pneg %p1256_p0 }
  0x2b   : > { %1132 = dma.hbm_to_vmem [thread:$0]  (!%p1547_p11), %s1837_s2, 2048, %s211_s30, [#allocation6], %s1827_s10, %s1827_s10, %s1828_s11  }
  0x2c   : > { %p1264_p9 = pnand %p1263_p7, %p1257_p5 }
  0x2e   : > { %1267 = shalt.err (!%p1264_p9)
}
  0x2f   : > { %s1838_s3 = sld [smem:[#allocation22_spill]]  ;;  %s41_s17 = sadd.s32 1, %s1442_s22 }
  0x30   : > { %s50_s25 = sadd.s32 1, %s1434_s20  ;;  %p43_p12 = scmp.ge.s32.totalorder %s41_s17, 2 }
  0x31   : > { %p57_p13 = scmp.ne.s32.totalorder %s1434_s20, %s1430_s19  ;;  %p58_p0 = scmp.eq.s32.totalorder %s1446_s23, 0 }
  0x32   : > { %p1152_p5 = scmp.lt.s32.totalorder %s1446_s23, 2  ;;  %s1853_s17 = smov (%p43_p12, %s41_s17), 0 }
  0x33   : > { %1839 = sst [smem:[#allocation19_spill]] %s1853_s17  ;;  %p59_p10 = por %p58_p0, %p57_p13 }
  0x34   : > { %p1585_p3 = por %p157_p2, %p57_p13  ;;  %s45_s30 = ssub.s32 %s1442_s22, %s1853_s17 }
  0x35   : > { %1135 = dma.hbm_to_vmem [thread:$0]  (!%p1547_p11), %s1838_s3, 2048, %s224_s8, [#allocation9], %s1827_s10, %s1827_s10, %s1828_s11  }
  0x36   : > { %s237_s6 = sand.u32 1, %s1434_s20   ;;  %p48_p7 = scmp.eq.s32.totalorder %s45_s30, 0 }
  0x37   : > { %s886_s7 = sshll.u32 %s237_s6, 2  ;;  %s887_s8 = sshll.u32 %s1442_s22, 6 }
  0x38   : > { %s1594_s9 = scalar_select %p48_p7, %s1434_s20, %s50_s25  }
  0x39   : > { %s1841_s0 = sld [smem:[#allocation20_spill]]  ;;  %s241_s15 = scalar_lea.vmem [#allocation2], %s886_s7 }
  0x3a   : > { %s249_s16 = sshll.u32 %s241_s15, 4  ;;  %p1601_p11 = pnand %p1152_p5, %p59_p10  ;;  %s250_s16 = int_to_ptr.vmem [resolvable:$true] %s249_s16 }
  0x3b   : > { %s888_s11 = sshll.u32 %s237_s6, 7  ;;  %s238_s30 = scalar_lea.sflag [#allocation3], %s237_s6 }
  0x3c   : > { %p1270_p2 = pneg %p1601_p11  ;;  %s1281_s25 = scalar_lea.vmem %s250_s16, 64 }
  0x3d   : > { %p1282_p9 = scmp.ne.s32.totalorder %s250_s16, %s1281_s25  ;;  %s1452_s7 = smov [#allocation2]  }
  0x3f   : > { %s247_s14 = scalar_lea.hbm %s1841_s0, %s887_s8  ;;  %p1284_p12 = pnand %p1282_p9, %p1270_p2 }
  0x40   : > { %s1286_s8 = sshll.u32 %s1452_s7, 4  ;;  %s1287_s8 = int_to_ptr.vmem [resolvable:$false] %s1286_s8 }
  0x41   : > { %p1285_p13 = pneg %p1284_p12  ;;  %s1288_s12 = scalar_lea.vmem %s1287_s8, 128 }
  0x42   : > { %p1289_p0 = scmp.lt.s32.totalorder %s250_s16, %s1287_s8  ;;  %p1290_p5 = scmp.lt.s32.totalorder %s1288_s12, %s1281_s25 }
  0x44   : > { %p1291_p10 = por %p1290_p5, %p1289_p0 }
  0x46   : > { %p1292_p7 = pnand %p1291_p10, %p1285_p13 }
  0x48   : > { %1295 = shalt.err (!%p1292_p7)
}
  0x49   : > { %1139 = dma.hbm_to_vmem [thread:$0]  (!%p1601_p11), %s247_s14, 64, %s250_s16, %s238_s30  }
  0x4a   : > { %s904_s6 = sshll.u32 %s1442_s22, 11  ;;  %s260_s13 = scalar_lea.vmem [#allocation5], %s888_s11 }
  0x4b   : > { %s267_s15 = sshll.u32 %s260_s13, 4  ;;  %s256_s0 = sand.u32 1, %s1446_s23   ;;  %s268_s15 = int_to_ptr.vmem [resolvable:$true] %s267_s15 }
  0x4c   : > { %s266_s3 = scalar_lea.hbm %s1822_s1, %s904_s6  ;;  %s257_s8 = scalar_lea.sflag [#allocation6], %s256_s0 }
  0x4d   : > { %s1309_s25 = scalar_lea.vmem %s268_s15, 2048  ;;  %s1453_s12 = smov [#allocation5]  }
  0x4e   : > { %p1310_p9 = scmp.ne.s32.totalorder %s268_s15, %s1309_s25  ;;  %s1314_s17 = sshll.u32 %s1453_s12, 4  ;;  %s1315_s17 = int_to_ptr.vmem [resolvable:$false] %s1314_s17 }
  0x4f   : > { %s1316_s14 = scalar_lea.vmem %s1315_s17, 4096  ;;  %p1317_p0 = scmp.lt.s32.totalorder %s268_s15, %s1315_s17 }
  0x50   : > { %p1312_p12 = pnand %p1310_p9, %p1270_p2  ;;  %p1318_p5 = scmp.lt.s32.totalorder %s1316_s14, %s1309_s25 }
  0x52   : > { %p1313_p13 = pneg %p1312_p12  ;;  %p1319_p10 = por %p1318_p5, %p1317_p0 }
  0x54   : > { %p1320_p7 = pnand %p1319_p10, %p1313_p13 }
  0x56   : > { %1323 = shalt.err (!%p1320_p7)
}
  0x57   : > { %s1843_s2 = smov 8   ;;  %s1844_s11 = smov 128  }
  0x58   : > { %1142 = dma.hbm_to_vmem [thread:$0]  (!%p1601_p11), %s266_s3, 2048, %s268_s15, %s257_s8, %s1844_s11, %s1844_s11, %s1843_s2  }
  0x59   : > { %279 = sbr.rel (%p1538_p8) target bundleno = 1089 (0x441), region = 36  ;;  %s1628_s0 = sand.u32 (!%p1538_p8), 1, %s1430_s19  }
  0x5a   : > { %s1631_s17 = sshll.u32 (!%p1538_p8), %s1628_s0, 2  ;;  %s282_s16 = scalar_lea.sflag (!%p1538_p8), [#allocation3], %s1628_s0 }
  0x5b   : > { %s285_s30 = scalar_lea.vmem (!%p1538_p8), [#allocation2], %s1631_s17 }
  0x5e   : > { %1401 = dma.done.wait (%p1528_p4), %s282_s16, 64  }
  0x5f   : > { %1403 = vsyncadd (%p1528_p4), %s282_s16, 4294967232  ;;  %s290_s3 = sand.u32 1, %s1519_s24   ;;  %s893_s28 = sshll.u32 %s1628_s0, 7 }
  0x60   : > { %s291_s10 = scalar_lea.sflag [#allocation6], %s290_s3  ;;  %s1641_s6 = scalar_lea.vmem [#allocation5], %s893_s28 }
  0x61   : > { %1405 = dma.done.wait (%p1528_p4), %s291_s10, 2048  }
  0x62   : > { %1407 = vsyncadd (%p1528_p4), %s291_s10, 4294965248 }
  0x63   : > { %1409 = dma.done.wait (%p64_p1), [#allocation6], 2048  }
  0x64   : > { %1411 = vsyncadd (%p64_p1), [#allocation6], 4294965248 }
  0x65   : > { %1413 = dma.done.wait (%p64_p1), [#allocation9], 2048  }
  0x66   : > { %1415 = vsyncadd (%p64_p1), [#allocation9], 4294965248  ;;  %v1454_v0 = vmov 0.0   ;;  %vm1455_vm0 = vmmov 0   ;;  %v355_v1 = vld [vmem:[%s1641_s6 + $0x78] sm:$0xff]  ;;  %v354_v2 = vld [vmem:[%s1641_s6 + $0x70] sm:$0xff]  ;;  %v426_v18 = vlaneseq }
  0x67   : > { %973 = vmatprep.subr.mxu0 %v1454_v0  ;;  %1005 = vmatprep.mubr.msk.f32.mxu0 %vm1455_vm0, %v1454_v0  ;;  %v353_v3 = vld [vmem:[%s1641_s6 + $0x68] sm:$0xff]  ;;  %v352_v4 = vld [vmem:[%s1641_s6 + $0x60] sm:$0xff]  ;;  %v351_v5 = vld [vmem:[%s1641_s6 + $0x58] sm:$0xff]  ;;  %vm430_vm2 = vcmask 1043456   ;;  %s338_s24 = scalar_lea.vmem [#allocation11], %s1631_s17  ;;  %s900_s26 = sshll.u32 %s1438_s21, 6 }
  0x68   : > { %1008 = vmatprep.subr.mxu1 %v1454_v0  ;;  %1040 = vmatprep.mubr.msk.f32.mxu1 %vm1455_vm0, %v1454_v0  ;;  %v350_v6 = vld [vmem:[%s1641_s6 + $0x50] sm:$0xff]  ;;  %v349_v7 = vld [vmem:[%s1641_s6 + $0x48] sm:$0xff]  ;;  %v348_v8 = vld [vmem:[%s1641_s6 + $0x40] sm:$0xff]  ;;  %v427_v19 = vand.u32 127, %v426_v18  ;;  %s721_s7 = scalar_lea.hbm %s1826_s5, %s900_s26  ;;  %s723_s8 = sshll.u32 %s338_s24, 4  ;;  %s724_s8 = int_to_ptr.vmem [resolvable:$true] %s723_s8 }
  0x69   : > { %974 = vmatpush3.xpose.msra.mxu0 %v355_v1  ;;  %1009 = vmatpush3.msra.mxu1 %v355_v1  ;;  %v347_v9 = vld [vmem:[%s1641_s6 + $0x38] sm:$0xff]  ;;  %v346_v10 = vld [vmem:[%s1641_s6 + $0x30] sm:$0xff]  ;;  %v345_v11 = vld [vmem:[%s1641_s6 + $0x28] sm:$0xff]  ;;  %s693_s25 = scalar_lea.sflag [#allocation12], %s1628_s0  ;;  %s1324_s12 = scalar_lea.vmem %s724_s8, 64 }
  0x6a   : > { %975 = vmatprep.subr.mxu0 %v1454_v0  ;;  %1010 = vmatprep.subr.mxu1 %v1454_v0  ;;  %v344_v12 = vld [vmem:[%s1641_s6 + $0x20] sm:$0xff]  ;;  %v343_v13 = vld [vmem:[%s1641_s6 + $0x18] sm:$0xff]  ;;  %v342_v14 = vld [vmem:[%s1641_s6 + $0x10] sm:$0xff]  ;;  %vm428_vm1 = vcmp.lt.s32.totalorder %v427_v19, 8  ;;  %p1325_p1 = scmp.ne.s32.totalorder %s724_s8, %s1324_s12  ;;  %s1456_s14 = smov [#allocation11]  }
  0x6b   : > { %1011 = vmatpush3.msra.mxu1 %v354_v2  ;;  %v341_v15 = vld [vmem:[%s1641_s6 + $0x8] sm:$0xff]  ;;  %v340_v16 = vld [vmem:[%s1641_s6] sm:$0xff]  ;;  %v1710_v17 = vld [vmem:[%s285_s30] sm:$0xf]  ;;  %s1328_s2 = sshll.u32 %s1456_s14, 4  ;;  %s1329_s2 = int_to_ptr.vmem [resolvable:$false] %s1328_s2 }
  0x6c   : > { %1012 = vmatprep.subr.mxu1 %v1454_v0  ;;  %v527_v29 = vld [vmem:[#allocation7 + $0x78] sm:$0xff]  ;;  %v526_v30 = vld [vmem:[#allocation7 + $0x70] sm:$0xff]  ;;  %v525_v31 = vld [vmem:[#allocation7 + $0x68] sm:$0xff]  ;;  %p1326_p4 = pnand %p1325_p1, %p1585_p3  ;;  %s1330_s11 = scalar_lea.vmem %s1329_s2, 128 }
  0x6d   : > { %976 = vmatpush3.xpose.msra.mxu0 %v354_v2  ;;  %1013 = vmatpush3.msra.mxu1 %v353_v3  ;;  %v524_v32 = vld [vmem:[#allocation7 + $0x60] sm:$0xff]  ;;  %v523_v33 = vld [vmem:[#allocation7 + $0x58] sm:$0xff]  ;;  %v522_v34 = vld [vmem:[#allocation7 + $0x50] sm:$0xff]  ;;  %p1331_p11 = scmp.lt.s32.totalorder %s724_s8, %s1329_s2  ;;  %p1332_p2 = scmp.lt.s32.totalorder %s1330_s11, %s1324_s12 }
  0x6e   : > { %977 = vmatprep.subr.mxu0 %v1454_v0  ;;  %1014 = vmatprep.subr.mxu1 %v1454_v0  ;;  %v521_v35 = vld [vmem:[#allocation7 + $0x48] sm:$0xff]  ;;  %v520_v36 = vld [vmem:[#allocation7 + $0x40] sm:$0xff]  ;;  %v519_v37 = vld [vmem:[#allocation7 + $0x38] sm:$0xff]  ;;  %p1327_p8 = pneg %p1326_p4 }
  0x6f   : > { %1015 = vmatpush3.msra.mxu1 %v352_v4  ;;  %v518_v38 = vld [vmem:[#allocation7 + $0x30] sm:$0xff]  ;;  %v517_v39 = vld [vmem:[#allocation7 + $0x28] sm:$0xff]  ;;  %v516_v40 = vld [vmem:[#allocation7 + $0x20] sm:$0xff]  ;;  %p1333_p9 = por %p1332_p2, %p1331_p11 }
  0x70   : > { %1016 = vmatprep.subr.mxu1 %v1454_v0  ;;  %v515_v41 = vld [vmem:[#allocation7 + $0x18] sm:$0xff]  ;;  %v514_v42 = vld [vmem:[#allocation7 + $0x10] sm:$0xff]  ;;  %v513_v43 = vld [vmem:[#allocation7 + $0x8] sm:$0xff] }
  0x71   : > { %978 = vmatpush3.xpose.msra.mxu0 %v353_v3  ;;  %1017 = vmatpush3.msra.mxu1 %v351_v5  ;;  %v543_v47 = vld [vmem:[#allocation8 + $0x78] sm:$0xff]  ;;  %v542_v48 = vld [vmem:[#allocation8 + $0x70] sm:$0xff]  ;;  %v541_v49 = vld [vmem:[#allocation8 + $0x68] sm:$0xff]  ;;  %p1334_p12 = pnand %p1333_p9, %p1327_p8 }
  0x72   : > { %979 = vmatprep.subr.mxu0 %v1454_v0  ;;  %1018 = vmatprep.subr.mxu1 %v1454_v0  ;;  %v540_v50 = vld [vmem:[#allocation8 + $0x60] sm:$0xff]  ;;  %v539_v51 = vld [vmem:[#allocation8 + $0x58] sm:$0xff]  ;;  %v538_v52 = vld [vmem:[#allocation8 + $0x50] sm:$0xff] }
  0x73   : > { %1019 = vmatpush3.msra.mxu1 %v350_v6  ;;  %v537_v53 = vld [vmem:[#allocation8 + $0x48] sm:$0xff]  ;;  %v536_v54 = vld [vmem:[#allocation8 + $0x40] sm:$0xff]  ;;  %v535_v55 = vld [vmem:[#allocation8 + $0x38] sm:$0xff] }
  0x74   : > { %1020 = vmatprep.subr.mxu1 %v1454_v0  ;;  %v534_v56 = vld [vmem:[#allocation8 + $0x30] sm:$0xff]  ;;  %v533_v57 = vld [vmem:[#allocation8 + $0x28] sm:$0xff]  ;;  %v532_v58 = vld [vmem:[#allocation8 + $0x20] sm:$0xff] }
  0x75   : > { %980 = vmatpush3.xpose.msra.mxu0 %v352_v4  ;;  %1021 = vmatpush3.msra.mxu1 %v349_v7  ;;  %v531_v59 = vld [vmem:[#allocation8 + $0x18] sm:$0xff]  ;;  %v530_v60 = vld [vmem:[#allocation8 + $0x10] sm:$0xff]  ;;  %v529_v61 = vld [vmem:[#allocation8 + $0x8] sm:$0xff] }
  0x76   : > { %981 = vmatprep.subr.mxu0 %v1454_v0  ;;  %1022 = vmatprep.subr.mxu1 %v1454_v0  ;;  %v528_v62 = vld [vmem:[#allocation8] sm:$0xff] }
  0x77   : > { %1023 = vmatpush3.msra.mxu1 %v348_v8  ;;  %v512_v63 = vld [vmem:[#allocation7] sm:$0xff] }
  0x78   : > { %1024 = vmatprep.subr.mxu1 %v1454_v0 }
  0x79   : > { %982 = vmatpush3.xpose.msra.mxu0 %v351_v5  ;;  %1025 = vmatpush3.msra.mxu1 %v347_v9 }
  0x7a   : > { %983 = vmatprep.subr.mxu0 %v1454_v0  ;;  %1026 = vmatprep.subr.mxu1 %v1454_v0 }
  0x7b   : > { %1027 = vmatpush3.msra.mxu1 %v346_v10 }
  0x7c   : > { %1028 = vmatprep.subr.mxu1 %v1454_v0 }
  0x7d   : > { %984 = vmatpush3.xpose.msra.mxu0 %v350_v6  ;;  %1029 = vmatpush3.msra.mxu1 %v345_v11 }
  0x7e   : > { %985 = vmatprep.subr.mxu0 %v1454_v0  ;;  %1030 = vmatprep.subr.mxu1 %v1454_v0 }
  0x7f   : > { %1031 = vmatpush3.msra.mxu1 %v344_v12 }
  0x80   : > { %1032 = vmatprep.subr.mxu1 %v1454_v0 }
  0x81   : > { %986 = vmatpush3.xpose.msra.mxu0 %v349_v7  ;;  %1033 = vmatpush3.msra.mxu1 %v343_v13 }
  0x82   : > { %987 = vmatprep.subr.mxu0 %v1454_v0  ;;  %1034 = vmatprep.subr.mxu1 %v1454_v0 }
  0x83   : > { %1035 = vmatpush3.msra.mxu1 %v342_v14 }
  0x84   : > { %1036 = vmatprep.subr.mxu1 %v1454_v0 }
  0x85   : > { %988 = vmatpush3.xpose.msra.mxu0 %v348_v8  ;;  %1037 = vmatpush3.msra.mxu1 %v341_v15 }
  0x86   : > { %989 = vmatprep.subr.mxu0 %v1454_v0  ;;  %1038 = vmatprep.subr.mxu1 %v1454_v0 }
  0x87   : > { %1039 = vmatpush3.msra.mxu1 %v340_v16 }
  0x88   : > { %1043 = vmatprep.subr.mxu1 %v1454_v0 }
  0x89   : > { %990 = vmatpush3.xpose.msra.mxu0 %v347_v9 }
  0x8a   : > { %991 = vmatprep.subr.mxu0 %v1454_v0 }
  0x8d   : > { %992 = vmatpush3.xpose.msra.mxu0 %v346_v10 }
  0x8e   : > { %993 = vmatprep.subr.mxu0 %v1454_v0 }
  0x91   : > { %994 = vmatpush3.xpose.msra.mxu0 %v345_v11 }
  0x92   : > { %995 = vmatprep.subr.mxu0 %v1454_v0 }
  0x95   : > { %996 = vmatpush3.xpose.msra.mxu0 %v344_v12 }
  0x96   : > { %997 = vmatprep.subr.mxu0 %v1454_v0 }
  0x99   : > { %998 = vmatpush3.xpose.msra.mxu0 %v343_v13 }
  0x9a   : > { %999 = vmatprep.subr.mxu0 %v1454_v0 }
  0x9d   : > { %1000 = vmatpush3.xpose.msra.mxu0 %v342_v14 }
  0x9e   : > { %1001 = vmatprep.subr.mxu0 %v1454_v0 }
  0xa1   : > { %1002 = vmatpush3.xpose.msra.mxu0 %v341_v15 }
  0xa2   : > { %1003 = vmatprep.subr.mxu0 %v1454_v0 }
  0xa5   : > { %1004 = vmatpush3.xpose.msra.mxu0 %v340_v16 }
  0xa6   : > { %1078 = vmatprep.subr.mxu0 %v1454_v0 }
  0xa8   : > { %1006 = vmatmul.mubr.f32.vlgmr.msra.gmra.mxu0 %v1710_v17 }
  0xa9   : > { %1110 = vmatprep.mubr.msk.f32.mxu0 %vm1455_vm0, %v1454_v0  ;;  %1079 = vmatpush3.msra.mxu0 %v527_v29 }
  0xaa   : > { %1080 = vmatprep.subr.mxu0 %v1454_v0 }
  0xab   : > { %1081 = vmatpush3.msra.mxu0 %v526_v30 }
  0xac   : > { %1082 = vmatprep.subr.mxu0 %v1454_v0 }
  0xad   : > { %1083 = vmatpush3.msra.mxu0 %v525_v31 }
  0xae   : > { %1084 = vmatprep.subr.mxu0 %v1454_v0 }
  0xaf   : > { %1085 = vmatpush3.msra.mxu0 %v524_v32 }
  0xb0   : > { %1086 = vmatprep.subr.mxu0 %v1454_v0 }
  0xb1   : > { %1087 = vmatpush3.msra.mxu0 %v523_v33 }
  0xb2   : > { %1088 = vmatprep.subr.mxu0 %v1454_v0 }
  0xb3   : > { %1089 = vmatpush3.msra.mxu0 %v522_v34 }
  0xb4   : > { %1090 = vmatprep.subr.mxu0 %v1454_v0 }
  0xb5   : > { %1091 = vmatpush3.msra.mxu0 %v521_v35 }
  0xb6   : > { %1092 = vmatprep.subr.mxu0 %v1454_v0 }
  0xb7   : > { %1093 = vmatpush3.msra.mxu0 %v520_v36 }
  0xb8   : > { %1094 = vmatprep.subr.mxu0 %v1454_v0 }
  0xb9   : > { %1095 = vmatpush3.msra.mxu0 %v519_v37 }
  0xba   : > { %1096 = vmatprep.subr.mxu0 %v1454_v0 }
  0xbb   : > { %1097 = vmatpush3.msra.mxu0 %v518_v38 }
  0xbc   : > { %1098 = vmatprep.subr.mxu0 %v1454_v0 }
  0xbd   : > { %1099 = vmatpush3.msra.mxu0 %v517_v39 }
  0xbe   : > { %1100 = vmatprep.subr.mxu0 %v1454_v0 }
  0xbf   : > { %1101 = vmatpush3.msra.mxu0 %v516_v40 }
  0xc0   : > { %1102 = vmatprep.subr.mxu0 %v1454_v0 }
  0xc1   : > { %1103 = vmatpush3.msra.mxu0 %v515_v41 }
  0xc2   : > { %1104 = vmatprep.subr.mxu0 %v1454_v0 }
  0xc3   : > { %1105 = vmatpush3.msra.mxu0 %v514_v42 }
  0xc4   : > { %1106 = vmatprep.subr.mxu0 %v1454_v0 }
  0xc5   : > { %1107 = vmatpush3.msra.mxu0 %v513_v43 }
  0xc6   : > { %1108 = vmatprep.subr.mxu0 %v1454_v0 }
  0xc7   : > { %1109 = vmatpush3.msra.mxu0 %v512_v63 }
 0x168   : > { %v422_v20 = vpop.f32.mrf.mxu0 }
 0x169   : > { %v429_v21 = vsel %vm428_vm1, %v422_v20, -inf }
 0x16a   : > { %v1007_v22 = vpop.f32.mrf.mxu0  ;;  %v431_v23 = vsel %vm430_vm2, %v429_v21, -inf }
 0x16b   : > { %432 = vmax.xlane.f32.xlu0 %v431_v23 }
 0x1f4   : > { %v433_v24 = vpop.xlane.xlu0 %432 }
 0x1f5   : > { %v434_v25 = vsub.f32 %v429_v21, %v433_v24 }
 0x1f7   : > { %v435_v26 = vmul.f32 1.442695, %v434_v25 }
 0x1f9   : > { %1210 = vpow2.f32 %v435_v26 }
 0x206   : > { %v1211_v27 = vpop.eup %1210 }
 0x207   : > { %v437_v28 = vsel %vm430_vm2, %v1211_v27, 0.0 }
 0x208   : > { %438 = vadd.xlane.f32.xlu0 %v437_v28 }
 0x291   : > { %v439_v44 = vpop.xlane.xlu0 %438 }
 0x292   : > { %1212 = vrcp.f32 %v439_v44 }
 0x29f   : > { %v1213_v45 = vpop.eup %1212 }
 0x2a0   : > { %v441_v46 = vmul.f32 %v1213_v45, %v1211_v27 }
 0x2a2   : > { %1041 = vmatmul.mubr.f32.vlgmr.msra.gmra.mxu1 %v441_v46  ;;  %686 = vst [vmem:[%s338_s24] sm:$0xf] %v441_v46 }
 0x2a3   : > { %1044 = vmatpush3.msra.mxu1 %v543_v47  ;;  %1075 = vmatprep.mubr.msk.f32.mxu1 %vm1455_vm0, %v1454_v0 }
 0x2a4   : > { %1045 = vmatprep.subr.mxu1 %v1454_v0 }
 0x2a5   : > { %1046 = vmatpush3.msra.mxu1 %v542_v48 }
 0x2a6   : > { %1047 = vmatprep.subr.mxu1 %v1454_v0 }
 0x2a7   : > { %1048 = vmatpush3.msra.mxu1 %v541_v49 }
 0x2a8   : > { %1049 = vmatprep.subr.mxu1 %v1454_v0 }
 0x2a9   : > { %1050 = vmatpush3.msra.mxu1 %v540_v50 }
 0x2aa   : > { %1051 = vmatprep.subr.mxu1 %v1454_v0 }
 0x2ab   : > { %1052 = vmatpush3.msra.mxu1 %v539_v51 }
 0x2ac   : > { %1053 = vmatprep.subr.mxu1 %v1454_v0 }
 0x2ad   : > { %1054 = vmatpush3.msra.mxu1 %v538_v52 }
 0x2ae   : > { %1055 = vmatprep.subr.mxu1 %v1454_v0 }
 0x2af   : > { %1056 = vmatpush3.msra.mxu1 %v537_v53 }
 0x2b0   : > { %1057 = vmatprep.subr.mxu1 %v1454_v0 }
 0x2b1   : > { %1058 = vmatpush3.msra.mxu1 %v536_v54 }
 0x2b2   : > { %1059 = vmatprep.subr.mxu1 %v1454_v0 }
 0x2b3   : > { %1060 = vmatpush3.msra.mxu1 %v535_v55 }
 0x2b4   : > { %1061 = vmatprep.subr.mxu1 %v1454_v0 }
 0x2b5   : > { %1062 = vmatpush3.msra.mxu1 %v534_v56 }
 0x2b6   : > { %1063 = vmatprep.subr.mxu1 %v1454_v0 }
 0x2b7   : > { %1064 = vmatpush3.msra.mxu1 %v533_v57 }
 0x2b8   : > { %1065 = vmatprep.subr.mxu1 %v1454_v0 }
 0x2b9   : > { %1066 = vmatpush3.msra.mxu1 %v532_v58 }
 0x2ba   : > { %1067 = vmatprep.subr.mxu1 %v1454_v0 }
 0x2bb   : > { %1068 = vmatpush3.msra.mxu1 %v531_v59 }
 0x2bc   : > { %1069 = vmatprep.subr.mxu1 %v1454_v0 }
 0x2bd   : > { %1070 = vmatpush3.msra.mxu1 %v530_v60 }
 0x2be   : > { %1071 = vmatprep.subr.mxu1 %v1454_v0 }
 0x2bf   : > { %1072 = vmatpush3.msra.mxu1 %v529_v61 }
 0x2c0   : > { %1073 = vmatprep.subr.mxu1 %v1454_v0 }
 0x2c1   : > { %1074 = vmatpush3.msra.mxu1 %v528_v62 }
 0x2c2   : > { %1076 = vmatmul.mubr.f32.vlgmr.msra.gmra.mxu1 %v1710_v17 }
 0x362   : > { %v508_v1 = vpop.f32.mrf.mxu1 }
 0x363   : > { %1111 = vmatmul.mubr.f32.vlgmr.msra.gmra.mxu0 %v508_v1 }
 0x364   : > { %v1042_v2 = vpop.f32.mrf.mxu1 }
 0x382   : > { %v610_v3 = vpop.f32.mrf.mxu1 }
 0x384   : > { %v1077_v4 = vpop.f32.mrf.mxu1 }
 0x385   : > { %1337 = shalt.err (!%p1334_p12)
}
 0x386   : > { %s1338_s16 = scalar_lea.hbm %s721_s7, 64  ;;  %s1342_s28 = scalar_lea.hbm %s1826_s5, 128 }
 0x387   : > { %p1339_p13 = scmp.ne.s32.totalorder %s721_s7, %s1338_s16  ;;  %p1343_p10 = scmp.lt.s32.totalorder %s721_s7, %s1826_s5 }
 0x388   : > { %p1344_p7 = scmp.lt.s32.totalorder %s1342_s28, %s1338_s16 }
 0x389   : > { %p1340_p0 = pnand %p1339_p13, %p1585_p3 }
 0x38a   : > { %p1345_p1 = por %p1344_p7, %p1343_p10 }
 0x38b   : > { %p1341_p5 = pneg %p1340_p0 }
 0x38d   : > { %p1346_p4 = pnand %p1345_p1, %p1341_p5 }
 0x38f   : > { %1349 = shalt.err (!%p1346_p4)
}
 0x390   : > { %1126 = dma.vmem_to_hbm [thread:$0]  (%p1585_p3), %s724_s8, 64, %s721_s7, %s693_s25  }
 0x391   : > { %s331_s24 = scalar_lea.vmem [#allocation10], %s1631_s17  ;;  %s1779_s14 = scalar_lea.hbm %s1825_s4, %s900_s26 }
 0x392   : > { %s708_s13 = sshll.u32 %s331_s24, 4  ;;  %s688_s2 = scalar_lea.sflag [#allocation4], %s1628_s0  ;;  %s709_s13 = int_to_ptr.vmem [resolvable:$true] %s708_s13 }
 0x393   : > { %s1350_s11 = scalar_lea.vmem %s709_s13, 64  ;;  %s1457_s7 = smov [#allocation10]  }
 0x394   : > { %p1351_p8 = scmp.ne.s32.totalorder %s709_s13, %s1350_s11  ;;  %s1354_s8 = sshll.u32 %s1457_s7, 4  ;;  %s1355_s8 = int_to_ptr.vmem [resolvable:$false] %s1354_s8 }
 0x395   : > { %s1356_s17 = scalar_lea.vmem %s1355_s8, 128  ;;  %p1357_p9 = scmp.lt.s32.totalorder %s709_s13, %s1355_s8 }
 0x396   : > { %p1352_p11 = pnand %p1351_p8, %p1585_p3  ;;  %p1358_p12 = scmp.lt.s32.totalorder %s1356_s17, %s1350_s11 }
 0x398   : > { %p1353_p2 = pneg %p1352_p11  ;;  %p1359_p13 = por %p1358_p12, %p1357_p9 }
 0x39a   : > { %p1360_p0 = pnand %p1359_p13, %p1353_p2 }
 0x423   : > { %v680_v0 = vpop.f32.mrf.mxu0 }
 0x424   : > { %v681_v5 = vadd.f32 %v680_v0, %v610_v3 }
 0x425   : > { %v1112_v6 = vpop.f32.mrf.mxu0 }
 0x426   : > { %1214 = vtanh.f32 %v681_v5 }
 0x433   : > { %v1215_v7 = vpop.eup %1214 }
 0x434   : > { %685 = vst [vmem:[%s331_s24] sm:$0xf] %v1215_v7 }
 0x435   : > { %1363 = shalt.err (!%p1360_p0)
}
 0x436   : > { %s1364_s21 = scalar_lea.hbm %s1779_s14, 64  ;;  %s1368_s25 = scalar_lea.hbm %s1825_s4, 128 }
 0x437   : > { %p1365_p5 = scmp.ne.s32.totalorder %s1779_s14, %s1364_s21  ;;  %p1369_p1 = scmp.lt.s32.totalorder %s1779_s14, %s1825_s4 }
 0x438   : > { %p1370_p4 = scmp.lt.s32.totalorder %s1368_s25, %s1364_s21 }
 0x439   : > { %p1366_p10 = pnand %p1365_p5, %p1585_p3 }
 0x43a   : > { %p1371_p8 = por %p1370_p4, %p1369_p1 }
 0x43b   : > { %p1367_p7 = pneg %p1366_p10 }
 0x43d   : > { %p1372_p11 = pnand %p1371_p8, %p1367_p7 }
 0x43f   : > { %1375 = shalt.err (!%p1372_p11)
}
 0x440   : > { %1125 = dma.vmem_to_hbm [thread:$0]  (%p1585_p3), %s709_s13, 64, %s1779_s14, %s688_s2  }
 0x441 PF: > { %s735_s3 = sand.u32 1, %s1426_s18   ;;  %p1845_p2 = scmp.ge.s32.totalorder %s1446_s23, 2 }
 0x442   : > { %s736_s28 = scalar_lea.sflag [#allocation4], %s735_s3 }
 0x443   : > { %p1144_p9 = pnand %p1845_p2, %p1533_p6 }
 0x445   : > { %p1145_p12 = pneg %p1144_p9 }
 0x447   : > { %1417 = dma.done.wait (%p1145_p12), %s736_s28, 64  }
 0x448   : > { %1419 = vsyncadd (%p1145_p12), %s736_s28, 4294967232  ;;  %s745_s10 = scalar_lea.sflag [#allocation12], %s735_s3 }
 0x449   : > { %1421 = dma.done.wait (%p1145_p12), %s745_s10, 64  }
 0x44a   : > { %1423 = vsyncadd (%p1145_p12), %s745_s10, 4294967232  ;;  %s29_s23 = sadd.s32 1, %s1446_s23   ;;  %s1846_s29 = sld [smem:[#allocation19_spill]] }
 0x44b   : > { %p26_p13 = scmp.ge.s32.totalorder %s29_s23, 4   ;;  %s1847_s18 = smov %s1430_s19 }
 0x44c   : > { %s1848_s19 = smov %s1434_s20  ;;  %s1849_s20 = smov %s1594_s9 }
 0x44d   : > { %s1850_s21 = smov %s1442_s22  ;;  %28 = sbr.rel (!%p26_p13) target bundleno = 15 (0xf), region = 119 }
 0x450   : > { %s1851_s22 = smov %s1846_s29 }
 0x452   :  { %750 = vsyncpa [#allocation3], 1 }
 0x453   :  { %752 = vsyncpa [#allocation3 + $0x1], 1 }
 0x454   :  { %753 = vsyncpa [#allocation6], 1 }
 0x455   :  { %755 = vsyncpa [#allocation6 + $0x1], 1 }
 0x456   :  { %756 = vsyncpa [#allocation9], 1 }
 0x457   :  { %757 = vsyncpa [#allocation4], 1 }
 0x458   :  { %759 = vsyncpa [#allocation4 + $0x1], 1 }
 0x459   :  { %760 = vsyncpa [#allocation12], 1 }
 0x45a   :  { %762 = vsyncpa [#allocation12 + $0x1], 1 }

// kernel: tpu_custom_call.1
= control target key start
LH: loop header
LB: loop body
LE: loop exit
PB: predicated region body
PF: predicated region fallthrough
CT: control target
= control target key end

     0   :  { %s1821_s0 = inlined_call_operand.hbm [shape: f32[2,4,128], index: 0, kind: input, shape index: {}]   ;;  %s1822_s1 = inlined_call_operand.hbm [shape: f32[2,128,128], index: 1, kind: input, shape index: {}]   ;;  %s1823_s2 = inlined_call_operand.hbm [shape: f32[128,128], index: 2, kind: input, shape index: {}]   ;;  %s1824_s3 = inlined_call_operand.hbm [shape: f32[128,128], index: 3, kind: input, shape index: {}]   ;;  %s1825_s4 = inlined_call_operand.hbm [shape: f32[4,256], index: 4, kind: output, shape index: {0}]   ;;  %s1826_s5 = inlined_call_operand.hbm [shape: f32[4,256], index: 5, kind: output, shape index: {1}]  }
   0x1   :  { %1830 = sst [smem:[#allocation20_spill]] %s1821_s0 }
   0x2   :  { %1831 = sst [smem:[#allocation21_spill]] %s1823_s2 }
   0x3   :  { %1832 = sst [smem:[#allocation22_spill]] %s1824_s3 }
   0x4   :  { %11 = vsyncpa [#allocation3], 0 }
   0x5   :  { %13 = vsyncpa [#allocation3 + $0x1], 0 }
   0x6   :  { %14 = vsyncpa [#allocation6], 0 }
   0x7   :  { %16 = vsyncpa [#allocation6 + $0x1], 0 }
   0x8   :  { %17 = vsyncpa [#allocation9], 0 }
   0x9   :  { %18 = vsyncpa [#allocation4], 0 }
   0xa   :  { %20 = vsyncpa [#allocation4 + $0x1], 0 }
   0xb   :  { %21 = vsyncpa [#allocation12], 0 }
   0xc   :  { %23 = vsyncpa [#allocation12 + $0x1], 0  ;;  %s1488_s18 = smov 0   ;;  %s1490_s19 = smov 0  }
   0xd   :  { %s1492_s20 = smov 0   ;;  %s1494_s21 = smov 0  }
   0xe   :  { %s1496_s22 = smov 0   ;;  %s1498_s23 = smov 0  }
   0xf LB: > { %s1519_s24 = sadd.s32 4294967295, %s1446_s23   ;;  %s881_s25 = sadd.s32 4294967294, %s1446_s23   ;;  %s1446_s23 = sphi %s1498_s23, %s29_s23   ;;  %s1442_s22 = sphi %s1496_s22, %s1851_s22   ;;  %s1438_s21 = sphi %s1494_s21, %s1850_s21   ;;  %s1434_s20 = sphi %s1492_s20, %s1849_s20   ;;  %s1430_s19 = sphi %s1490_s19, %s1848_s19   ;;  %s1426_s18 = sphi %s1488_s18, %s1847_s18  }
  0x10   : > { %p63_p0 = scmp.ne.s32.totalorder %s1430_s19, %s1426_s18  ;;  %p64_p1 = scmp.eq.s32.totalorder %s1519_s24, 0 }
  0x11   : > { %p157_p2 = scmp.eq.s32.totalorder %s1519_s24, 1  ;;  %p163_p3 = scmp.eq.s32.totalorder %s881_s25, 1 }
  0x12   : > { %p1528_p4 = por %p64_p1, %p63_p0  ;;  %p882_p5 = scmp.ge.s32.totalorder %s1446_s23, 1 }
  0x13   : > { %p1533_p6 = por %p163_p3, %p63_p0  ;;  %p198_p7 = scmp.lt.s32.totalorder %s1446_s23, 3 }
  0x14   : > { %s1448_s29 = smov [#allocation7]   ;;  %s1449_s7 = smov [#allocation8]  }
  0x15   : > { %p1538_p8 = pnand %p882_p5, %p198_p7  ;;  %s210_s30 = sshll.u32 %s1448_s29, 4  ;;  %s211_s30 = int_to_ptr.vmem [resolvable:$true] %s210_s30 }
  0x16   : > { %s223_s8 = sshll.u32 %s1449_s7, 4  ;;  %s1227_s9 = scalar_lea.vmem %s211_s30, 2048  ;;  %s224_s8 = int_to_ptr.vmem [resolvable:$true] %s223_s8 }
  0x17   : > { %p1129_p9 = pneg %p1538_p8  ;;  %p1228_p13 = scmp.ne.s32.totalorder %s211_s30, %s1227_s9 }
  0x18   : > { %p1235_p5 = scmp.lt.s32.totalorder %s211_s30, %s211_s30  ;;  %p1236_p7 = scmp.lt.s32.totalorder %s1227_s9, %s1227_s9 }
  0x19   : > { %p1547_p11 = pnand %p1129_p9, %p64_p1 }
  0x1a   : > { %p1237_p10 = por %p1236_p7, %p1235_p5 }
  0x1b   : > { %p1218_p12 = pneg %p1547_p11 }
  0x1d   : > { %p1230_p0 = pnand %p1228_p13, %p1218_p12 }
  0x1f   : > { %p1231_p3 = pneg %p1230_p0 }
  0x21   : > { %p1238_p9 = pnand %p1237_p10, %p1231_p3 }
  0x23   : > { %1241 = shalt.err (!%p1238_p9)
}
  0x24   : > { %s1827_s10 = smov 128   ;;  %s1828_s11 = smov 8  }
  0x25   : > { %s1837_s2 = sld [smem:[#allocation21_spill]]  ;;  %s1253_s14 = scalar_lea.vmem %s224_s8, 2048 }
  0x26   : > { %p1254_p13 = scmp.ne.s32.totalorder %s224_s8, %s1253_s14  ;;  %p1261_p10 = scmp.lt.s32.totalorder %s224_s8, %s224_s8 }
  0x27   : > { %p1262_p3 = scmp.lt.s32.totalorder %s1253_s14, %s1253_s14 }
  0x28   : > { %p1256_p0 = pnand %p1254_p13, %p1218_p12 }
  0x29   : > { %p1263_p7 = por %p1262_p3, %p1261_p10 }
  0x2a   : > { %p1257_p5 = pneg %p1256_p0 }
  0x2b   : > { %1132 = dma.hbm_to_vmem [thread:$0]  (!%p1547_p11), %s1837_s2, 2048, %s211_s30, [#allocation6], %s1827_s10, %s1827_s10, %s1828_s11  }
  0x2c   : > { %p1264_p9 = pnand %p1263_p7, %p1257_p5 }
  0x2e   : > { %1267 = shalt.err (!%p1264_p9)
}
  0x2f   : > { %s1838_s3 = sld [smem:[#allocation22_spill]]  ;;  %s41_s17 = sadd.s32 1, %s1442_s22 }
  0x30   : > { %s50_s25 = sadd.s32 1, %s1434_s20  ;;  %p43_p12 = scmp.ge.s32.totalorder %s41_s17, 2 }
  0x31   : > { %p57_p13 = scmp.ne.s32.totalorder %s1434_s20, %s1430_s19  ;;  %p58_p0 = scmp.eq.s32.totalorder %s1446_s23, 0 }
  0x32   : > { %p1152_p5 = scmp.lt.s32.totalorder %s1446_s23, 2  ;;  %s1853_s17 = smov (%p43_p12, %s41_s17), 0 }
  0x33   : > { %1839 = sst [smem:[#allocation19_spill]] %s1853_s17  ;;  %p59_p10 = por %p58_p0, %p57_p13 }
  0x34   : > { %p1585_p3 = por %p157_p2, %p57_p13  ;;  %s45_s30 = ssub.s32 %s1442_s22, %s1853_s17 }
  0x35   : > { %1135 = dma.hbm_to_vmem [thread:$0]  (!%p1547_p11), %s1838_s3, 2048, %s224_s8, [#allocation9], %s1827_s10, %s1827_s10, %s1828_s11  }
  0x36   : > { %s237_s6 = sand.u32 1, %s1434_s20   ;;  %p48_p7 = scmp.eq.s32.totalorder %s45_s30, 0 }
  0x37   : > { %s886_s7 = sshll.u32 %s237_s6, 2  ;;  %s887_s8 = sshll.u32 %s1442_s22, 6 }
  0x38   : > { %s1594_s9 = scalar_select %p48_p7, %s1434_s20, %s50_s25  }
  0x39   : > { %s1841_s0 = sld [smem:[#allocation20_spill]]  ;;  %s241_s15 = scalar_lea.vmem [#allocation2], %s886_s7 }
  0x3a   : > { %s249_s16 = sshll.u32 %s241_s15, 4  ;;  %p1601_p11 = pnand %p1152_p5, %p59_p10  ;;  %s250_s16 = int_to_ptr.vmem [resolvable:$true] %s249_s16 }
  0x3b   : > { %s888_s11 = sshll.u32 %s237_s6, 7  ;;  %s238_s30 = scalar_lea.sflag [#allocation3], %s237_s6 }
  0x3c   : > { %p1270_p2 = pneg %p1601_p11  ;;  %s1281_s25 = scalar_lea.vmem %s250_s16, 64 }
  0x3d   : > { %p1282_p9 = scmp.ne.s32.totalorder %s250_s16, %s1281_s25  ;;  %s1452_s7 = smov [#allocation2]  }
  0x3f   : > { %s247_s14 = scalar_lea.hbm %s1841_s0, %s887_s8  ;;  %p1284_p12 = pnand %p1282_p9, %p1270_p2 }
  0x40   : > { %s1286_s8 = sshll.u32 %s1452_s7, 4  ;;  %s1287_s8 = int_to_ptr.vmem [resolvable:$false] %s1286_s8 }
  0x41   : > { %p1285_p13 = pneg %p1284_p12  ;;  %s1288_s12 = scalar_lea.vmem %s1287_s8, 128 }
  0x42   : > { %p1289_p0 = scmp.lt.s32.totalorder %s250_s16, %s1287_s8  ;;  %p1290_p5 = scmp.lt.s32.totalorder %s1288_s12, %s1281_s25 }
  0x44   : > { %p1291_p10 = por %p1290_p5, %p1289_p0 }
  0x46   : > { %p1292_p7 = pnand %p1291_p10, %p1285_p13 }
  0x48   : > { %1295 = shalt.err (!%p1292_p7)
}
  0x49   : > { %1139 = dma.hbm_to_vmem [thread:$0]  (!%p1601_p11), %s247_s14, 64, %s250_s16, %s238_s30  }
  0x4a   : > { %s904_s6 = sshll.u32 %s1442_s22, 11  ;;  %s260_s13 = scalar_lea.vmem [#allocation5], %s888_s11 }
  0x4b   : > { %s267_s15 = sshll.u32 %s260_s13, 4  ;;  %s256_s0 = sand.u32 1, %s1446_s23   ;;  %s268_s15 = int_to_ptr.vmem [resolvable:$true] %s267_s15 }
  0x4c   : > { %s266_s3 = scalar_lea.hbm %s1822_s1, %s904_s6  ;;  %s257_s8 = scalar_lea.sflag [#allocation6], %s256_s0 }
  0x4d   : > { %s1309_s25 = scalar_lea.vmem %s268_s15, 2048  ;;  %s1453_s12 = smov [#allocation5]  }
  0x4e   : > { %p1310_p9 = scmp.ne.s32.totalorder %s268_s15, %s1309_s25  ;;  %s1314_s17 = sshll.u32 %s1453_s12, 4  ;;  %s1315_s17 = int_to_ptr.vmem [resolvable:$false] %s1314_s17 }
  0x4f   : > { %s1316_s14 = scalar_lea.vmem %s1315_s17, 4096  ;;  %p1317_p0 = scmp.lt.s32.totalorder %s268_s15, %s1315_s17 }
  0x50   : > { %p1312_p12 = pnand %p1310_p9, %p1270_p2  ;;  %p1318_p5 = scmp.lt.s32.totalorder %s1316_s14, %s1309_s25 }
  0x52   : > { %p1313_p13 = pneg %p1312_p12  ;;  %p1319_p10 = por %p1318_p5, %p1317_p0 }
  0x54   : > { %p1320_p7 = pnand %p1319_p10, %p1313_p13 }
  0x56   : > { %1323 = shalt.err (!%p1320_p7)
}
  0x57   : > { %s1843_s2 = smov 8   ;;  %s1844_s11 = smov 128  }
  0x58   : > { %1142 = dma.hbm_to_vmem [thread:$0]  (!%p1601_p11), %s266_s3, 2048, %s268_s15, %s257_s8, %s1844_s11, %s1844_s11, %s1843_s2  }
  0x59   : > { %279 = sbr.rel (%p1538_p8) target bundleno = 1089 (0x441), region = 36  ;;  %s1628_s0 = sand.u32 (!%p1538_p8), 1, %s1430_s19  }
  0x5a   : > { %s1631_s17 = sshll.u32 (!%p1538_p8), %s1628_s0, 2  ;;  %s282_s16 = scalar_lea.sflag (!%p1538_p8), [#allocation3], %s1628_s0 }
  0x5b   : > { %s285_s30 = scalar_lea.vmem (!%p1538_p8), [#allocation2], %s1631_s17 }
  0x5e   : > { %1401 = dma.done.wait (%p1528_p4), %s282_s16, 64  }
  0x5f   : > { %1403 = vsyncadd (%p1528_p4), %s282_s16, 4294967232  ;;  %s290_s3 = sand.u32 1, %s1519_s24   ;;  %s893_s28 = sshll.u32 %s1628_s0, 7 }
  0x60   : > { %s291_s10 = scalar_lea.sflag [#allocation6], %s290_s3  ;;  %s1641_s6 = scalar_lea.vmem [#allocation5], %s893_s28 }
  0x61   : > { %1405 = dma.done.wait (%p1528_p4), %s291_s10, 2048  }
  0x62   : > { %1407 = vsyncadd (%p1528_p4), %s291_s10, 4294965248 }
  0x63   : > { %1409 = dma.done.wait (%p64_p1), [#allocation6], 2048  }
  0x64   : > { %1411 = vsyncadd (%p64_p1), [#allocation6], 4294965248 }
  0x65   : > { %1413 = dma.done.wait (%p64_p1), [#allocation9], 2048  }
  0x66   : > { %1415 = vsyncadd (%p64_p1), [#allocation9], 4294965248  ;;  %v1454_v0 = vmov 0.0   ;;  %vm1455_vm0 = vmmov 0   ;;  %v355_v1 = vld [vmem:[%s1641_s6 + $0x78] sm:$0xff]  ;;  %v354_v2 = vld [vmem:[%s1641_s6 + $0x70] sm:$0xff]  ;;  %v426_v18 = vlaneseq }
  0x67   : > { %973 = vmatprep.subr.mxu0 %v1454_v0  ;;  %1005 = vmatprep.mubr.msk.f32.mxu0 %vm1455_vm0, %v1454_v0  ;;  %v353_v3 = vld [vmem:[%s1641_s6 + $0x68] sm:$0xff]  ;;  %v352_v4 = vld [vmem:[%s1641_s6 + $0x60] sm:$0xff]  ;;  %v351_v5 = vld [vmem:[%s1641_s6 + $0x58] sm:$0xff]  ;;  %vm430_vm2 = vcmask 1043456   ;;  %s338_s24 = scalar_lea.vmem [#allocation11], %s1631_s17  ;;  %s900_s26 = sshll.u32 %s1438_s21, 6 }
  0x68   : > { %1008 = vmatprep.subr.mxu1 %v1454_v0  ;;  %1040 = vmatprep.mubr.msk.f32.mxu1 %vm1455_vm0, %v1454_v0  ;;  %v350_v6 = vld [vmem:[%s1641_s6 + $0x50] sm:$0xff]  ;;  %v349_v7 = vld [vmem:[%s1641_s6 + $0x48] sm:$0xff]  ;;  %v348_v8 = vld [vmem:[%s1641_s6 + $0x40] sm:$0xff]  ;;  %v427_v19 = vand.u32 127, %v426_v18  ;;  %s721_s7 = scalar_lea.hbm %s1826_s5, %s900_s26  ;;  %s723_s8 = sshll.u32 %s338_s24, 4  ;;  %s724_s8 = int_to_ptr.vmem [resolvable:$true] %s723_s8 }
  0x69   : > { %974 = vmatpush3.xpose.msra.mxu0 %v355_v1  ;;  %1009 = vmatpush3.msra.mxu1 %v355_v1  ;;  %v347_v9 = vld [vmem:[%s1641_s6 + $0x38] sm:$0xff]  ;;  %v346_v10 = vld [vmem:[%s1641_s6 + $0x30] sm:$0xff]  ;;  %v345_v11 = vld [vmem:[%s1641_s6 + $0x28] sm:$0xff]  ;;  %s693_s25 = scalar_lea.sflag [#allocation12], %s1628_s0  ;;  %s1324_s12 = scalar_lea.vmem %s724_s8, 64 }
  0x6a   : > { %975 = vmatprep.subr.mxu0 %v1454_v0  ;;  %1010 = vmatprep.subr.mxu1 %v1454_v0  ;;  %v344_v12 = vld [vmem:[%s1641_s6 + $0x20] sm:$0xff]  ;;  %v343_v13 = vld [vmem:[%s1641_s6 + $0x18] sm:$0xff]  ;;  %v342_v14 = vld [vmem:[%s1641_s6 + $0x10] sm:$0xff]  ;;  %vm428_vm1 = vcmp.lt.s32.totalorder %v427_v19, 8  ;;  %p1325_p1 = scmp.ne.s32.totalorder %s724_s8, %s1324_s12  ;;  %s1456_s14 = smov [#allocation11]  }
  0x6b   : > { %1011 = vmatpush3.msra.mxu1 %v354_v2  ;;  %v341_v15 = vld [vmem:[%s1641_s6 + $0x8] sm:$0xff]  ;;  %v340_v16 = vld [vmem:[%s1641_s6] sm:$0xff]  ;;  %v1710_v17 = vld [vmem:[%s285_s30] sm:$0xf]  ;;  %s1328_s2 = sshll.u32 %s1456_s14, 4  ;;  %s1329_s2 = int_to_ptr.vmem [resolvable:$false] %s1328_s2 }
  0x6c   : > { %1012 = vmatprep.subr.mxu1 %v1454_v0  ;;  %v527_v29 = vld [vmem:[#allocation7 + $0x78] sm:$0xff]  ;;  %v526_v30 = vld [vmem:[#allocation7 + $0x70] sm:$0xff]  ;;  %v525_v31 = vld [vmem:[#allocation7 + $0x68] sm:$0xff]  ;;  %p1326_p4 = pnand %p1325_p1, %p1585_p3  ;;  %s1330_s11 = scalar_lea.vmem %s1329_s2, 128 }
  0x6d   : > { %976 = vmatpush3.xpose.msra.mxu0 %v354_v2  ;;  %1013 = vmatpush3.msra.mxu1 %v353_v3  ;;  %v524_v32 = vld [vmem:[#allocation7 + $0x60] sm:$0xff]  ;;  %v523_v33 = vld [vmem:[#allocation7 + $0x58] sm:$0xff]  ;;  %v522_v34 = vld [vmem:[#allocation7 + $0x50] sm:$0xff]  ;;  %p1331_p11 = scmp.lt.s32.totalorder %s724_s8, %s1329_s2  ;;  %p1332_p2 = scmp.lt.s32.totalorder %s1330_s11, %s1324_s12 }
  0x6e   : > { %977 = vmatprep.subr.mxu0 %v1454_v0  ;;  %1014 = vmatprep.subr.mxu1 %v1454_v0  ;;  %v521_v35 = vld [vmem:[#allocation7 + $0x48] sm:$0xff]  ;;  %v520_v36 = vld [vmem:[#allocation7 + $0x40] sm:$0xff]  ;;  %v519_v37 = vld [vmem:[#allocation7 + $0x38] sm:$0xff]  ;;  %p1327_p8 = pneg %p1326_p4 }
  0x6f   : > { %1015 = vmatpush3.msra.mxu1 %v352_v4  ;;  %v518_v38 = vld [vmem:[#allocation7 + $0x30] sm:$0xff]  ;;  %v517_v39 = vld [vmem:[#allocation7 + $0x28] sm:$0xff]  ;;  %v516_v40 = vld [vmem:[#allocation7 + $0x20] sm:$0xff]  ;;  %p1333_p9 = por %p1332_p2, %p1331_p11 }
  0x70   : > { %1016 = vmatprep.subr.mxu1 %v1454_v0  ;;  %v515_v41 = vld [vmem:[#allocation7 + $0x18] sm:$0xff]  ;;  %v514_v42 = vld [vmem:[#allocation7 + $0x10] sm:$0xff]  ;;  %v513_v43 = vld [vmem:[#allocation7 + $0x8] sm:$0xff] }
  0x71   : > { %978 = vmatpush3.xpose.msra.mxu0 %v353_v3  ;;  %1017 = vmatpush3.msra.mxu1 %v351_v5  ;;  %v543_v47 = vld [vmem:[#allocation8 + $0x78] sm:$0xff]  ;;  %v542_v48 = vld [vmem:[#allocation8 + $0x70] sm:$0xff]  ;;  %v541_v49 = vld [vmem:[#allocation8 + $0x68] sm:$0xff]  ;;  %p1334_p12 = pnand %p1333_p9, %p1327_p8 }
  0x72   : > { %979 = vmatprep.subr.mxu0 %v1454_v0  ;;  %1018 = vmatprep.subr.mxu1 %v1454_v0  ;;  %v540_v50 = vld [vmem:[#allocation8 + $0x60] sm:$0xff]  ;;  %v539_v51 = vld [vmem:[#allocation8 + $0x58] sm:$0xff]  ;;  %v538_v52 = vld [vmem:[#allocation8 + $0x50] sm:$0xff] }
  0x73   : > { %1019 = vmatpush3.msra.mxu1 %v350_v6  ;;  %v537_v53 = vld [vmem:[#allocation8 + $0x48] sm:$0xff]  ;;  %v536_v54 = vld [vmem:[#allocation8 + $0x40] sm:$0xff]  ;;  %v535_v55 = vld [vmem:[#allocation8 + $0x38] sm:$0xff] }
  0x74   : > { %1020 = vmatprep.subr.mxu1 %v1454_v0  ;;  %v534_v56 = vld [vmem:[#allocation8 + $0x30] sm:$0xff]  ;;  %v533_v57 = vld [vmem:[#allocation8 + $0x28] sm:$0xff]  ;;  %v532_v58 = vld [vmem:[#allocation8 + $0x20] sm:$0xff] }
  0x75   : > { %980 = vmatpush3.xpose.msra.mxu0 %v352_v4  ;;  %1021 = vmatpush3.msra.mxu1 %v349_v7  ;;  %v531_v59 = vld [vmem:[#allocation8 + $0x18] sm:$0xff]  ;;  %v530_v60 = vld [vmem:[#allocation8 + $0x10] sm:$0xff]  ;;  %v529_v61 = vld [vmem:[#allocation8 + $0x8] sm:$0xff] }
  0x76   : > { %981 = vmatprep.subr.mxu0 %v1454_v0  ;;  %1022 = vmatprep.subr.mxu1 %v1454_v0  ;;  %v528_v62 = vld [vmem:[#allocation8] sm:$0xff] }
  0x77   : > { %1023 = vmatpush3.msra.mxu1 %v348_v8  ;;  %v512_v63 = vld [vmem:[#allocation7] sm:$0xff] }
  0x78   : > { %1024 = vmatprep.subr.mxu1 %v1454_v0 }
  0x79   : > { %982 = vmatpush3.xpose.msra.mxu0 %v351_v5  ;;  %1025 = vmatpush3.msra.mxu1 %v347_v9 }
  0x7a   : > { %983 = vmatprep.subr.mxu0 %v1454_v0  ;;  %1026 = vmatprep.subr.mxu1 %v1454_v0 }
  0x7b   : > { %1027 = vmatpush3.msra.mxu1 %v346_v10 }
  0x7c   : > { %1028 = vmatprep.subr.mxu1 %v1454_v0 }
  0x7d   : > { %984 = vmatpush3.xpose.msra.mxu0 %v350_v6  ;;  %1029 = vmatpush3.msra.mxu1 %v345_v11 }
  0x7e   : > { %985 = vmatprep.subr.mxu0 %v1454_v0  ;;  %1030 = vmatprep.subr.mxu1 %v1454_v0 }
  0x7f   : > { %1031 = vmatpush3.msra.mxu1 %v344_v12 }
  0x80   : > { %1032 = vmatprep.subr.mxu1 %v1454_v0 }
  0x81   : > { %986 = vmatpush3.xpose.msra.mxu0 %v349_v7  ;;  %1033 = vmatpush3.msra.mxu1 %v343_v13 }
  0x82   : > { %987 = vmatprep.subr.mxu0 %v1454_v0  ;;  %1034 = vmatprep.subr.mxu1 %v1454_v0 }
  0x83   : > { %1035 = vmatpush3.msra.mxu1 %v342_v14 }
  0x84   : > { %1036 = vmatprep.subr.mxu1 %v1454_v0 }
  0x85   : > { %988 = vmatpush3.xpose.msra.mxu0 %v348_v8  ;;  %1037 = vmatpush3.msra.mxu1 %v341_v15 }
  0x86   : > { %989 = vmatprep.subr.mxu0 %v1454_v0  ;;  %1038 = vmatprep.subr.mxu1 %v1454_v0 }
  0x87   : > { %1039 = vmatpush3.msra.mxu1 %v340_v16 }
  0x88   : > { %1043 = vmatprep.subr.mxu1 %v1454_v0 }
  0x89   : > { %990 = vmatpush3.xpose.msra.mxu0 %v347_v9 }
  0x8a   : > { %991 = vmatprep.subr.mxu0 %v1454_v0 }
  0x8d   : > { %992 = vmatpush3.xpose.msra.mxu0 %v346_v10 }
  0x8e   : > { %993 = vmatprep.subr.mxu0 %v1454_v0 }
  0x91   : > { %994 = vmatpush3.xpose.msra.mxu0 %v345_v11 }
  0x92   : > { %995 = vmatprep.subr.mxu0 %v1454_v0 }
  0x95   : > { %996 = vmatpush3.xpose.msra.mxu0 %v344_v12 }
  0x96   : > { %997 = vmatprep.subr.mxu0 %v1454_v0 }
  0x99   : > { %998 = vmatpush3.xpose.msra.mxu0 %v343_v13 }
  0x9a   : > { %999 = vmatprep.subr.mxu0 %v1454_v0 }
  0x9d   : > { %1000 = vmatpush3.xpose.msra.mxu0 %v342_v14 }
  0x9e   : > { %1001 = vmatprep.subr.mxu0 %v1454_v0 }
  0xa1   : > { %1002 = vmatpush3.xpose.msra.mxu0 %v341_v15 }
  0xa2   : > { %1003 = vmatprep.subr.mxu0 %v1454_v0 }
  0xa5   : > { %1004 = vmatpush3.xpose.msra.mxu0 %v340_v16 }
  0xa6   : > { %1078 = vmatprep.subr.mxu0 %v1454_v0 }
  0xa8   : > { %1006 = vmatmul.mubr.f32.vlgmr.msra.gmra.mxu0 %v1710_v17 }
  0xa9   : > { %1110 = vmatprep.mubr.msk.f32.mxu0 %vm1455_vm0, %v1454_v0  ;;  %1079 = vmatpush3.msra.mxu0 %v527_v29 }
  0xaa   : > { %1080 = vmatprep.subr.mxu0 %v1454_v0 }
  0xab   : > { %1081 = vmatpush3.msra.mxu0 %v526_v30 }
  0xac   : > { %1082 = vmatprep.subr.mxu0 %v1454_v0 }
  0xad   : > { %1083 = vmatpush3.msra.mxu0 %v525_v31 }
  0xae   : > { %1084 = vmatprep.subr.mxu0 %v1454_v0 }
  0xaf   : > { %1085 = vmatpush3.msra.mxu0 %v524_v32 }
  0xb0   : > { %1086 = vmatprep.subr.mxu0 %v1454_v0 }
  0xb1   : > { %1087 = vmatpush3.msra.mxu0 %v523_v33 }
  0xb2   : > { %1088 = vmatprep.subr.mxu0 %v1454_v0 }
  0xb3   : > { %1089 = vmatpush3.msra.mxu0 %v522_v34 }
  0xb4   : > { %1090 = vmatprep.subr.mxu0 %v1454_v0 }
  0xb5   : > { %1091 = vmatpush3.msra.mxu0 %v521_v35 }
  0xb6   : > { %1092 = vmatprep.subr.mxu0 %v1454_v0 }
  0xb7   : > { %1093 = vmatpush3.msra.mxu0 %v520_v36 }
  0xb8   : > { %1094 = vmatprep.subr.mxu0 %v1454_v0 }
  0xb9   : > { %1095 = vmatpush3.msra.mxu0 %v519_v37 }
  0xba   : > { %1096 = vmatprep.subr.mxu0 %v1454_v0 }
  0xbb   : > { %1097 = vmatpush3.msra.mxu0 %v518_v38 }
  0xbc   : > { %1098 = vmatprep.subr.mxu0 %v1454_v0 }
  0xbd   : > { %1099 = vmatpush3.msra.mxu0 %v517_v39 }
  0xbe   : > { %1100 = vmatprep.subr.mxu0 %v1454_v0 }
  0xbf   : > { %1101 = vmatpush3.msra.mxu0 %v516_v40 }
  0xc0   : > { %1102 = vmatprep.subr.mxu0 %v1454_v0 }
  0xc1   : > { %1103 = vmatpush3.msra.mxu0 %v515_v41 }
  0xc2   : > { %1104 = vmatprep.subr.mxu0 %v1454_v0 }
  0xc3   : > { %1105 = vmatpush3.msra.mxu0 %v514_v42 }
  0xc4   : > { %1106 = vmatprep.subr.mxu0 %v1454_v0 }
  0xc5   : > { %1107 = vmatpush3.msra.mxu0 %v513_v43 }
  0xc6   : > { %1108 = vmatprep.subr.mxu0 %v1454_v0 }
  0xc7   : > { %1109 = vmatpush3.msra.mxu0 %v512_v63 }
 0x168   : > { %v422_v20 = vpop.f32.mrf.mxu0 }
 0x169   : > { %v429_v21 = vsel %vm428_vm1, %v422_v20, -inf }
 0x16a   : > { %v1007_v22 = vpop.f32.mrf.mxu0  ;;  %v431_v23 = vsel %vm430_vm2, %v429_v21, -inf }
 0x16b   : > { %432 = vmax.xlane.f32.xlu0 %v431_v23 }
 0x1f4   : > { %v433_v24 = vpop.xlane.xlu0 %432 }
 0x1f5   : > { %v434_v25 = vsub.f32 %v429_v21, %v433_v24 }
 0x1f7   : > { %v435_v26 = vmul.f32 1.442695, %v434_v25 }
 0x1f9   : > { %1210 = vpow2.f32 %v435_v26 }
 0x206   : > { %v1211_v27 = vpop.eup %1210 }
 0x207   : > { %v437_v28 = vsel %vm430_vm2, %v1211_v27, 0.0 }
 0x208   : > { %438 = vadd.xlane.f32.xlu0 %v437_v28 }
 0x291   : > { %v439_v44 = vpop.xlane.xlu0 %438 }
 0x292   : > { %1212 = vrcp.f32 %v439_v44 }
 0x29f   : > { %v1213_v45 = vpop.eup %1212 }
 0x2a0   : > { %v441_v46 = vmul.f32 %v1213_v45, %v1211_v27 }
 0x2a2   : > { %1041 = vmatmul.mubr.f32.vlgmr.msra.gmra.mxu1 %v441_v46  ;;  %686 = vst [vmem:[%s338_s24] sm:$0xf] %v441_v46 }
 0x2a3   : > { %1044 = vmatpush3.msra.mxu1 %v543_v47  ;;  %1075 = vmatprep.mubr.msk.f32.mxu1 %vm1455_vm0, %v1454_v0 }
 0x2a4   : > { %1045 = vmatprep.subr.mxu1 %v1454_v0 }
 0x2a5   : > { %1046 = vmatpush3.msra.mxu1 %v542_v48 }
 0x2a6   : > { %1047 = vmatprep.subr.mxu1 %v1454_v0 }
 0x2a7   : > { %1048 = vmatpush3.msra.mxu1 %v541_v49 }
 0x2a8   : > { %1049 = vmatprep.subr.mxu1 %v1454_v0 }
 0x2a9   : > { %1050 = vmatpush3.msra.mxu1 %v540_v50 }
 0x2aa   : > { %1051 = vmatprep.subr.mxu1 %v1454_v0 }
 0x2ab   : > { %1052 = vmatpush3.msra.mxu1 %v539_v51 }
 0x2ac   : > { %1053 = vmatprep.subr.mxu1 %v1454_v0 }
 0x2ad   : > { %1054 = vmatpush3.msra.mxu1 %v538_v52 }
 0x2ae   : > { %1055 = vmatprep.subr.mxu1 %v1454_v0 }
 0x2af   : > { %1056 = vmatpush3.msra.mxu1 %v537_v53 }
 0x2b0   : > { %1057 = vmatprep.subr.mxu1 %v1454_v0 }
 0x2b1   : > { %1058 = vmatpush3.msra.mxu1 %v536_v54 }
 0x2b2   : > { %1059 = vmatprep.subr.mxu1 %v1454_v0 }
 0x2b3   : > { %1060 = vmatpush3.msra.mxu1 %v535_v55 }
 0x2b4   : > { %1061 = vmatprep.subr.mxu1 %v1454_v0 }
 0x2b5   : > { %1062 = vmatpush3.msra.mxu1 %v534_v56 }
 0x2b6   : > { %1063 = vmatprep.subr.mxu1 %v1454_v0 }
 0x2b7   : > { %1064 = vmatpush3.msra.mxu1 %v533_v57 }
 0x2b8   : > { %1065 = vmatprep.subr.mxu1 %v1454_v0 }
 0x2b9   : > { %1066 = vmatpush3.msra.mxu1 %v532_v58 }
 0x2ba   : > { %1067 = vmatprep.subr.mxu1 %v1454_v0 }
 0x2bb   : > { %1068 = vmatpush3.msra.mxu1 %v531_v59 }
 0x2bc   : > { %1069 = vmatprep.subr.mxu1 %v1454_v0 }
 0x2bd   : > { %1070 = vmatpush3.msra.mxu1 %v530_v60 }
 0x2be   : > { %1071 = vmatprep.subr.mxu1 %v1454_v0 }
 0x2bf   : > { %1072 = vmatpush3.msra.mxu1 %v529_v61 }
 0x2c0   : > { %1073 = vmatprep.subr.mxu1 %v1454_v0 }
 0x2c1   : > { %1074 = vmatpush3.msra.mxu1 %v528_v62 }
 0x2c2   : > { %1076 = vmatmul.mubr.f32.vlgmr.msra.gmra.mxu1 %v1710_v17 }
 0x362   : > { %v508_v1 = vpop.f32.mrf.mxu1 }
 0x363   : > { %1111 = vmatmul.mubr.f32.vlgmr.msra.gmra.mxu0 %v508_v1 }
 0x364   : > { %v1042_v2 = vpop.f32.mrf.mxu1 }
 0x382   : > { %v610_v3 = vpop.f32.mrf.mxu1 }
 0x384   : > { %v1077_v4 = vpop.f32.mrf.mxu1 }
 0x385   : > { %1337 = shalt.err (!%p1334_p12)
}
 0x386   : > { %s1338_s16 = scalar_lea.hbm %s721_s7, 64  ;;  %s1342_s28 = scalar_lea.hbm %s1826_s5, 128 }
 0x387   : > { %p1339_p13 = scmp.ne.s32.totalorder %s721_s7, %s1338_s16  ;;  %p1343_p10 = scmp.lt.s32.totalorder %s721_s7, %s1826_s5 }
 0x388   : > { %p1344_p7 = scmp.lt.s32.totalorder %s1342_s28, %s1338_s16 }
 0x389   : > { %p1340_p0 = pnand %p1339_p13, %p1585_p3 }
 0x38a   : > { %p1345_p1 = por %p1344_p7, %p1343_p10 }
 0x38b   : > { %p1341_p5 = pneg %p1340_p0 }
 0x38d   : > { %p1346_p4 = pnand %p1345_p1, %p1341_p5 }
 0x38f   : > { %1349 = shalt.err (!%p1346_p4)
}
 0x390   : > { %1126 = dma.vmem_to_hbm [thread:$0]  (%p1585_p3), %s724_s8, 64, %s721_s7, %s693_s25  }
 0x391   : > { %s331_s24 = scalar_lea.vmem [#allocation10], %s1631_s17  ;;  %s1779_s14 = scalar_lea.hbm %s1825_s4, %s900_s26 }
 0x392   : > { %s708_s13 = sshll.u32 %s331_s24, 4  ;;  %s688_s2 = scalar_lea.sflag [#allocation4], %s1628_s0  ;;  %s709_s13 = int_to_ptr.vmem [resolvable:$true] %s708_s13 }
 0x393   : > { %s1350_s11 = scalar_lea.vmem %s709_s13, 64  ;;  %s1457_s7 = smov [#allocation10]  }
 0x394   : > { %p1351_p8 = scmp.ne.s32.totalorder %s709_s13, %s1350_s11  ;;  %s1354_s8 = sshll.u32 %s1457_s7, 4  ;;  %s1355_s8 = int_to_ptr.vmem [resolvable:$false] %s1354_s8 }
 0x395   : > { %s1356_s17 = scalar_lea.vmem %s1355_s8, 128  ;;  %p1357_p9 = scmp.lt.s32.totalorder %s709_s13, %s1355_s8 }
 0x396   : > { %p1352_p11 = pnand %p1351_p8, %p1585_p3  ;;  %p1358_p12 = scmp.lt.s32.totalorder %s1356_s17, %s1350_s11 }
 0x398   : > { %p1353_p2 = pneg %p1352_p11  ;;  %p1359_p13 = por %p1358_p12, %p1357_p9 }
 0x39a   : > { %p1360_p0 = pnand %p1359_p13, %p1353_p2 }
 0x423   : > { %v680_v0 = vpop.f32.mrf.mxu0 }
 0x424   : > { %v681_v5 = vadd.f32 %v680_v0, %v610_v3 }
 0x425   : > { %v1112_v6 = vpop.f32.mrf.mxu0 }
 0x426   : > { %1214 = vtanh.f32 %v681_v5 }
 0x433   : > { %v1215_v7 = vpop.eup %1214 }
 0x434   : > { %685 = vst [vmem:[%s331_s24] sm:$0xf] %v1215_v7 }
 0x435   : > { %1363 = shalt.err (!%p1360_p0)
}
 0x436   : > { %s1364_s21 = scalar_lea.hbm %s1779_s14, 64  ;;  %s1368_s25 = scalar_lea.hbm %s1825_s4, 128 }
 0x437   : > { %p1365_p5 = scmp.ne.s32.totalorder %s1779_s14, %s1364_s21  ;;  %p1369_p1 = scmp.lt.s32.totalorder %s1779_s14, %s1825_s4 }
 0x438   : > { %p1370_p4 = scmp.lt.s32.totalorder %s1368_s25, %s1364_s21 }
 0x439   : > { %p1366_p10 = pnand %p1365_p5, %p1585_p3 }
 0x43a   : > { %p1371_p8 = por %p1370_p4, %p1369_p1 }
 0x43b   : > { %p1367_p7 = pneg %p1366_p10 }
 0x43d   : > { %p1372_p11 = pnand %p1371_p8, %p1367_p7 }
 0x43f   : > { %1375 = shalt.err (!%p1372_p11)
}
 0x440   : > { %1125 = dma.vmem_to_hbm [thread:$0]  (%p1585_p3), %s709_s13, 64, %s1779_s14, %s688_s2  }
 0x441 PF: > { %s735_s3 = sand.u32 1, %s1426_s18   ;;  %p1845_p2 = scmp.ge.s32.totalorder %s1446_s23, 2 }
 0x442   : > { %s736_s28 = scalar_lea.sflag [#allocation4], %s735_s3 }
 0x443   : > { %p1144_p9 = pnand %p1845_p2, %p1533_p6 }
 0x445   : > { %p1145_p12 = pneg %p1144_p9 }
 0x447   : > { %1417 = dma.done.wait (%p1145_p12), %s736_s28, 64  }
 0x448   : > { %1419 = vsyncadd (%p1145_p12), %s736_s28, 4294967232  ;;  %s745_s10 = scalar_lea.sflag [#allocation12], %s735_s3 }
 0x449   : > { %1421 = dma.done.wait (%p1145_p12), %s745_s10, 64  }
 0x44a   : > { %1423 = vsyncadd (%p1145_p12), %s745_s10, 4294967232  ;;  %s29_s23 = sadd.s32 1, %s1446_s23   ;;  %s1846_s29 = sld [smem:[#allocation19_spill]] }
 0x44b   : > { %p26_p13 = scmp.ge.s32.totalorder %s29_s23, 4   ;;  %s1847_s18 = smov %s1430_s19 }
 0x44c   : > { %s1848_s19 = smov %s1434_s20  ;;  %s1849_s20 = smov %s1594_s9 }
 0x44d   : > { %s1850_s21 = smov %s1442_s22  ;;  %28 = sbr.rel (!%p26_p13) target bundleno = 15 (0xf), region = 119 }
 0x450   : > { %s1851_s22 = smov %s1846_s29 }
 0x452   :  { %750 = vsyncpa [#allocation3], 1 }
 0x453   :  { %752 = vsyncpa [#allocation3 + $0x1], 1 }
 0x454   :  { %753 = vsyncpa [#allocation6], 1 }
 0x455   :  { %755 = vsyncpa [#allocation6 + $0x1], 1 }
 0x456   :  { %756 = vsyncpa [#allocation9], 1 }
 0x457   :  { %757 = vsyncpa [#allocation4], 1 }
 0x458   :  { %759 = vsyncpa [#allocation4 + $0x1], 1 }
 0x459   :  { %760 = vsyncpa [#allocation12], 1 }
 0x45a   :  { %762 = vsyncpa [#allocation12 + $0x1], 1 }

</bundles_post_ra>
